<compile_context>
chip_gen: v6e
topology: v6e:2x2x1
jax: 0.10.0
libtpu: 0.0.40
codegen_flags: <defaults>
</compile_context>

<pallas_src>
import functools

import jax
import jax.numpy as jnp
import numpy as np
from jax import lax
from jax.experimental import pallas as pl
from jax.experimental.pallas import tpu as pltpu


def _dcl_kernel(d, H, W, C, tH,
                x_ref, w1_ref, b1_ref, w2_ref, b2_ref, o_ref, xs_ref):
    """One (batch b, row-tile t) grid step.

    x_ref  : (H, W, C)         f32  full image (resident across t; residual source)
    w1_ref : (9*C, C)          bf16 dilated 3x3 weights, rows ordered (ky, kx, cin)
    b1_ref : (1, C)            f32
    w2_ref : (C, C)            bf16 1x1 weights (cin, cout)
    b2_ref : (1, C)            f32
    o_ref  : (tH, W, C)        output row tile
    xs_ref : (tH+2d, W+2d, C)  bf16 zero-padded halo tile (rebuilt every step)
    """
    t = pl.program_id(1)
    n_t = pl.num_programs(1)
    row0 = pl.multiple_of(t * tH, tH)

    # Residual rows, kept in f32 exactly as in the PyTorch module.
    x_tile = x_ref[pl.ds(row0, tH), :, :].astype(jnp.float32)      # (tH, W, C)

    # ---- Build the zero-padded bf16 halo tile in VMEM (no cross-step state).
    # Width halo columns first (they cover the full height, incl. corners).
    zcol = jnp.zeros((tH + 2 * d, d, C), jnp.bfloat16)
    xs_ref[:, 0:d, :] = zcol
    xs_ref[:, d + W:d + W + d, :] = zcol
    # Interior rows: single f32 -> bf16 cast of the tile.
    xs_ref[d:d + tH, d:d + W, :] = x_tile.astype(jnp.bfloat16)

    zrow = jnp.zeros((d, W, C), jnp.bfloat16)

    # Top halo rows: zeros at the image border, neighbor rows otherwise.
    @pl.when(t == 0)
    def _():
        xs_ref[0:d, d:d + W, :] = zrow

    @pl.when(t > 0)
    def _():
        xs_ref[0:d, d:d + W, :] = (
            x_ref[pl.ds(row0 - d, d), :, :].astype(jnp.bfloat16))

    # Bottom halo rows.
    @pl.when(t == n_t - 1)
    def _():
        xs_ref[d + tH:d + tH + d, d:d + W, :] = zrow

    @pl.when(t < n_t - 1)
    def _():
        xs_ref[d + tH:d + tH + d, d:d + W, :] = (
            x_ref[pl.ds(row0 + tH, d), :, :].astype(jnp.bfloat16))

    # ---- im2col: fuse the 9 taps into a single K = 9*C MXU matmul.
    # Tap (ky, kx) of output row r / col w reads xs[ky*d + r, kx*d + w] ==
    # x[row0 + r + (ky-1)*d, w + (kx-1)*d] (zero outside) -- static slices only.
    taps = [xs_ref[ky * d:ky * d + tH, kx * d:kx * d + W, :]
            for ky in range(3) for kx in range(3)]
    patch = jnp.concatenate(taps, axis=-1)                 # (tH, W, 9C) bf16
    patch2 = patch.reshape(tH * W, 9 * C)

    h = jnp.dot(patch2, w1_ref[...],
                preferred_element_type=jnp.float32) + b1_ref[0]
    h = jnp.maximum(h, 0.0)                                # bias + ReLU in f32 (VPU)

    y = jnp.dot(h.astype(jnp.bfloat16), w2_ref[...],
                preferred_element_type=jnp.float32) + b2_ref[0]

    out2 = x_tile.reshape(tH * W, C) + y                   # exact f32 residual
    o_ref[...] = out2.reshape(tH, W, C).astype(o_ref.dtype)


def _pick_tile_h(H, W, d, target_rows=512):
    """Smallest divisor tH of H with tH*W >= target_rows (MXU M dim) and
    tH >= d (halo reads need a full dilation's worth of neighbor rows when
    there is more than one tile); otherwise the whole image."""
    for tH in range(1, H + 1):
        if H % tH:
            continue
        if tH != H and tH < d:
            continue
        if tH * W >= target_rows:
            return tH
    return H


def _vmem_cap_bytes():
    """Generation-aware VMEM cap with a v7x-safe 64 MiB fallback."""
    try:
        info = pltpu.get_tpu_info()
        cap = getattr(info, "vmem_capacity_bytes", None)
        if cap:
            return int(cap * 0.85)
    except Exception:
        pass
    return 64 * 2 ** 20


def _vmem_limit_bytes(H, W, C, d, tH, out_bytes):
    """Padded-layout VMEM budget with headroom, clamped to the chip cap."""
    def pad(n, m):
        return -(-n // m) * m
    lc = pad(C, 128)
    l9c = pad(9 * C, 128)
    x_blk = H * pad(W, 8) * lc * 4                      # resident f32 image block
    o_blk = tH * pad(W, 8) * lc * out_bytes             # output row tile
    xs = (tH + 2 * d) * pad(W + 2 * d, 16) * lc * 2     # bf16 halo scratch
    wts = pad(9 * C, 8) * lc * 2 + pad(C, 8) * lc * 2 + 2 * 8 * lc * 4
    patch = tH * pad(W, 16) * l9c * 2                   # im2col value
    interm = 3 * tH * pad(W, 8) * lc * 4                # h / y / residual values
    need = 2 * (x_blk + o_blk + wts) + xs + patch + interm
    return int(min(max(2 * need, 16 * 2 ** 20), _vmem_cap_bytes()))


def dcl_forward_nhwc(x_nhwc, params, *, stride, tile_h=None,
                     out_dtype=jnp.float32):
    """x_nhwc: (N, H, W, C) float32.  Returns (N, H, W, C) in out_dtype."""
    d = int(stride)
    assert d >= 1
    w1, b1, w2, b2 = params                      # (3,3,C,C), (C,), (C,C), (C,)
    N, H, W, C = x_nhwc.shape

    tH = _pick_tile_h(H, W, d) if tile_h is None else int(tile_h)
    assert H % tH == 0
    nHt = H // tH
    assert nHt == 1 or tH >= d, "row tile must cover the dilation halo"

    # bf16 MXU operands (f32 accumulation in-kernel); f32 biases for the VPU.
    w1f = w1.reshape(9 * C, C).astype(jnp.bfloat16)      # rows ordered (ky, kx, cin)
    w2b = w2.astype(jnp.bfloat16)
    b1_2d = b1.reshape(1, C).astype(jnp.float32)
    b2_2d = b2.reshape(1, C).astype(jnp.float32)

    kernel = functools.partial(_dcl_kernel, d, H, W, C, tH)
    out_bytes = jnp.dtype(out_dtype).itemsize

    return pl.pallas_call(
        kernel,
        out_shape=jax.ShapeDtypeStruct((N, H, W, C), out_dtype),
        grid_spec=pltpu.PrefetchScalarGridSpec(
            num_scalar_prefetch=0,
            grid=(N, nHt),
            in_specs=[
                # Full image per batch; constant block index along t, so it is
                # DMA'd only when the batch index changes.
                pl.BlockSpec((None, H, W, C), lambda b, t: (b, 0, 0, 0)),
                pl.BlockSpec((9 * C, C), lambda b, t: (0, 0)),
                pl.BlockSpec((1, C), lambda b, t: (0, 0)),
                pl.BlockSpec((C, C), lambda b, t: (0, 0)),
                pl.BlockSpec((1, C), lambda b, t: (0, 0)),
            ],
            out_specs=pl.BlockSpec((None, tH, W, C), lambda b, t: (b, t, 0, 0)),
            scratch_shapes=[
                pltpu.VMEM((tH + 2 * d, W + 2 * d, C), jnp.bfloat16),
            ],
        ),
        compiler_params=pltpu.CompilerParams(
            # No cross-step scratch state -> both axes can be megacore-sharded.
            dimension_semantics=("parallel", "parallel"),
            vmem_limit_bytes=_vmem_limit_bytes(H, W, C, d, tH, out_bytes),
        ),
    )(x_nhwc.astype(jnp.float32), w1f, b1_2d, w2b, b2_2d)


def dcl_forward(x_nchw, params, *, stride, tile_h=None, out_dtype=jnp.float32):
    """NCHW wrapper (PyTorch parity).  If the surrounding model runs NHWC,
    call dcl_forward_nhwc directly and skip both full-tensor transposes."""
    x = jnp.transpose(x_nchw, (0, 2, 3, 1))
    out = dcl_forward_nhwc(x, params, stride=stride, tile_h=tile_h,
                           out_dtype=out_dtype)
    return jnp.transpose(out, (0, 3, 1, 2))


def dcl_reference(x_nchw, params, *, stride):
    """Pure-JAX f32 reference (mirrors the PyTorch forward) for verification."""
    d = int(stride)
    w1, b1, w2, b2 = params
    x = jnp.transpose(x_nchw, (0, 2, 3, 1))
    h = lax.conv_general_dilated(
        x, w1, window_strides=(1, 1), padding=((d, d), (d, d)),
        rhs_dilation=(d, d),
        dimension_numbers=("NHWC", "HWIO", "NHWC")) + b1
    h = jnp.maximum(h, 0.0)
    y = lax.conv_general_dilated(
        h, w2.reshape(1, 1, *w2.shape), window_strides=(1, 1), padding="VALID",
        dimension_numbers=("NHWC", "HWIO", "NHWC")) + b2
    out = x + y
    return jnp.transpose(out, (0, 3, 1, 2))


def init_params(key, in_ch):
    """Deterministic synthetic parameters (shapes match the nn.Conv2d layers)."""
    k1, k2, k3, k4 = jax.random.split(key, 4)
    # Conv2d(in_ch, in_ch, 3) weight (out,in,3,3) -> stored as (3,3,in,out)
    w1 = jax.random.normal(k1, (3, 3, in_ch, in_ch), jnp.float32) * 0.1
    b1 = jax.random.normal(k2, (in_ch,), jnp.float32) * 0.1
    # Conv2d(in_ch, in_ch, 1) weight (out,in,1,1) -> stored as (in,out)
    w2 = jax.random.normal(k3, (in_ch, in_ch), jnp.float32) * 0.1
    b2 = jax.random.normal(k4, (in_ch,), jnp.float32) * 0.1
    return (w1, b1, w2, b2)


if __name__ == "__main__":
    N, C, H, W = 2, 4, 16, 16
    stride = 2  # dilation / padding of the 3x3 conv

    key = jax.random.PRNGKey(0)
    kx_key, kp_key = jax.random.split(key)
    x = jax.random.normal(kx_key, (N, C, H, W), jnp.float32)
    params = init_params(kp_key, C)

    out = jax.block_until_ready(dcl_forward(x, params, stride=stride))
    ref = jax.block_until_ready(dcl_reference(x, params, stride=stride))

    # bf16 matmul operands (f32 residual) -> loosened tolerance vs. f32 ref.
    np.testing.assert_allclose(np.asarray(out), np.asarray(ref),
                               rtol=5e-2, atol=5e-2)

    print("KERNEL_OK")
</pallas_src>

<mosaic_0001>
module attributes {stable_mosaic.version = 11 : i64} {
  func.func @_dcl_kernel(%arg0: i32, %arg1: i32, %arg2: memref<1x16x16x4xf32, #tpu.memory_space<vmem>>, %arg3: memref<36x4xbf16, #tpu.memory_space<vmem>>, %arg4: memref<1x4xf32, #tpu.memory_space<vmem>>, %arg5: memref<4x4xbf16, #tpu.memory_space<vmem>>, %arg6: memref<1x4xf32, #tpu.memory_space<vmem>>, %arg7: memref<1x16x16x4xf32, #tpu.memory_space<vmem>>, %arg8: memref<20x20x4xbf16, #tpu.memory_space<vmem>>) attributes {dimension_semantics = [#tpu.dimension_semantics<parallel>, #tpu.dimension_semantics<parallel>], iteration_bounds = array<i64: 2, 1>, scalar_prefetch = 0 : i64, scratch_operands = 1 : i64, tpu.core_type = #tpu.core_type<tc>, window_params = [{transform_indices = @transform_0, window_bounds = array<i64: 1, 16, 16, 4>}, {pipeline_mode = #tpu.pipeline_mode<synchronous>, transform_indices = @transform_1, window_bounds = array<i64: 36, 4>}, {pipeline_mode = #tpu.pipeline_mode<synchronous>, transform_indices = @transform_2, window_bounds = array<i64: 1, 4>}, {pipeline_mode = #tpu.pipeline_mode<synchronous>, transform_indices = @transform_3, window_bounds = array<i64: 4, 4>}, {pipeline_mode = #tpu.pipeline_mode<synchronous>, transform_indices = @transform_4, window_bounds = array<i64: 1, 4>}, {transform_indices = @transform_5, window_bounds = array<i64: 1, 16, 16, 4>}]} {
    %c16_i32 = arith.constant 16 : i32
    %0 = arith.muli %arg1, %c16_i32 : i32
    %1 = tpu.assume_multiple %0, 16 : i32
    %c0 = arith.constant 0 : index
    %2 = arith.index_cast %1 : i32 to index
    %c0_0 = arith.constant 0 : index
    %c0_1 = arith.constant 0 : index
    %3 = vector.load %arg2[%c0, %2, %c0_0, %c0_1] : memref<1x16x16x4xf32, #tpu.memory_space<vmem>>, vector<1x16x16x4xf32>
    %4 = vector.shape_cast %3 : vector<1x16x16x4xf32> to vector<16x16x4xf32>
    %cst = arith.constant 0.000000e+00 : bf16
    %5 = vector.broadcast %cst : bf16 to vector<20x2x4xbf16>
    %c0_2 = arith.constant 0 : index
    %c0_3 = arith.constant 0 : index
    %c0_4 = arith.constant 0 : index
    %6 = vector.load %arg8[%c0_2, %c0_3, %c0_4] : memref<20x20x4xbf16, #tpu.memory_space<vmem>>, vector<20x2x4xbf16>
    tpu.vector_store %arg8[%c0_2, %c0_3, %c0_4], %5 {strides = array<i32>} : memref<20x20x4xbf16, #tpu.memory_space<vmem>>, vector<20x2x4xbf16>,
    %c0_5 = arith.constant 0 : index
    %c18 = arith.constant 18 : index
    %c0_6 = arith.constant 0 : index
    %7 = vector.load %arg8[%c0_5, %c18, %c0_6] : memref<20x20x4xbf16, #tpu.memory_space<vmem>>, vector<20x2x4xbf16>
    tpu.vector_store %arg8[%c0_5, %c18, %c0_6], %5 {strides = array<i32>} : memref<20x20x4xbf16, #tpu.memory_space<vmem>>, vector<20x2x4xbf16>,
    %8 = arith.truncf %4 : vector<16x16x4xf32> to vector<16x16x4xbf16>
    %c2 = arith.constant 2 : index
    %c2_7 = arith.constant 2 : index
    %c0_8 = arith.constant 0 : index
    %9 = vector.load %arg8[%c2, %c2_7, %c0_8] : memref<20x20x4xbf16, #tpu.memory_space<vmem>>, vector<16x16x4xbf16>
    tpu.vector_store %arg8[%c2, %c2_7, %c0_8], %8 {strides = array<i32>} : memref<20x20x4xbf16, #tpu.memory_space<vmem>>, vector<16x16x4xbf16>,
    %cst_9 = arith.constant 0.000000e+00 : bf16
    %10 = vector.broadcast %cst_9 : bf16 to vector<2x16x4xbf16>
    %c0_i32 = arith.constant 0 : i32
    %11 = arith.cmpi eq, %arg1, %c0_i32 : i32
    %12 = arith.extui %11 : i1 to i32
    %c0_i32_10 = arith.constant 0 : i32
    %13 = arith.cmpi ne, %12, %c0_i32_10 : i32
    scf.if %13 {
      %c0_58 = arith.constant 0 : index
      %c2_59 = arith.constant 2 : index
      %c0_60 = arith.constant 0 : index
      %57 = vector.load %arg8[%c0_58, %c2_59, %c0_60] : memref<20x20x4xbf16, #tpu.memory_space<vmem>>, vector<2x16x4xbf16>
      tpu.vector_store %arg8[%c0_58, %c2_59, %c0_60], %10 {strides = array<i32>} : memref<20x20x4xbf16, #tpu.memory_space<vmem>>, vector<2x16x4xbf16>,
    } else {
    }
    %c0_i32_11 = arith.constant 0 : i32
    %14 = arith.cmpi sgt, %arg1, %c0_i32_11 : i32
    %15 = arith.extui %14 : i1 to i32
    %c0_i32_12 = arith.constant 0 : i32
    %16 = arith.cmpi ne, %15, %c0_i32_12 : i32
    scf.if %16 {
      %c2_i32 = arith.constant 2 : i32
      %57 = arith.subi %1, %c2_i32 : i32
      %c0_58 = arith.constant 0 : index
      %58 = arith.index_cast %57 : i32 to index
      %c0_59 = arith.constant 0 : index
      %c0_60 = arith.constant 0 : index
      %59 = vector.load %arg2[%c0_58, %58, %c0_59, %c0_60] : memref<1x16x16x4xf32, #tpu.memory_space<vmem>>, vector<1x2x16x4xf32>
      %60 = vector.shape_cast %59 : vector<1x2x16x4xf32> to vector<2x16x4xf32>
      %61 = arith.truncf %60 : vector<2x16x4xf32> to vector<2x16x4xbf16>
      %c0_61 = arith.constant 0 : index
      %c2_62 = arith.constant 2 : index
      %c0_63 = arith.constant 0 : index
      %62 = vector.load %arg8[%c0_61, %c2_62, %c0_63] : memref<20x20x4xbf16, #tpu.memory_space<vmem>>, vector<2x16x4xbf16>
      tpu.vector_store %arg8[%c0_61, %c2_62, %c0_63], %61 {strides = array<i32>} : memref<20x20x4xbf16, #tpu.memory_space<vmem>>, vector<2x16x4xbf16>,
    } else {
    }
    %c0_i32_13 = arith.constant 0 : i32
    %17 = arith.cmpi eq, %arg1, %c0_i32_13 : i32
    %18 = arith.extui %17 : i1 to i32
    %c0_i32_14 = arith.constant 0 : i32
    %19 = arith.cmpi ne, %18, %c0_i32_14 : i32
    scf.if %19 {
      %c18_58 = arith.constant 18 : index
      %c2_59 = arith.constant 2 : index
      %c0_60 = arith.constant 0 : index
      %57 = vector.load %arg8[%c18_58, %c2_59, %c0_60] : memref<20x20x4xbf16, #tpu.memory_space<vmem>>, vector<2x16x4xbf16>
      tpu.vector_store %arg8[%c18_58, %c2_59, %c0_60], %10 {strides = array<i32>} : memref<20x20x4xbf16, #tpu.memory_space<vmem>>, vector<2x16x4xbf16>,
    } else {
    }
    %c0_i32_15 = arith.constant 0 : i32
    %20 = arith.cmpi slt, %arg1, %c0_i32_15 : i32
    %21 = arith.extui %20 : i1 to i32
    %c0_i32_16 = arith.constant 0 : i32
    %22 = arith.cmpi ne, %21, %c0_i32_16 : i32
    scf.if %22 {
      %c16_i32_58 = arith.constant 16 : i32
      %57 = arith.addi %1, %c16_i32_58 : i32
      %c0_59 = arith.constant 0 : index
      %58 = arith.index_cast %57 : i32 to index
      %c0_60 = arith.constant 0 : index
      %c0_61 = arith.constant 0 : index
      %59 = vector.load %arg2[%c0_59, %58, %c0_60, %c0_61] : memref<1x16x16x4xf32, #tpu.memory_space<vmem>>, vector<1x2x16x4xf32>
      %60 = vector.shape_cast %59 : vector<1x2x16x4xf32> to vector<2x16x4xf32>
      %61 = arith.truncf %60 : vector<2x16x4xf32> to vector<2x16x4xbf16>
      %c18_62 = arith.constant 18 : index
      %c2_63 = arith.constant 2 : index
      %c0_64 = arith.constant 0 : index
      %62 = vector.load %arg8[%c18_62, %c2_63, %c0_64] : memref<20x20x4xbf16, #tpu.memory_space<vmem>>, vector<2x16x4xbf16>
      tpu.vector_store %arg8[%c18_62, %c2_63, %c0_64], %61 {strides = array<i32>} : memref<20x20x4xbf16, #tpu.memory_space<vmem>>, vector<2x16x4xbf16>,
    } else {
    }
    %c0_17 = arith.constant 0 : index
    %c0_18 = arith.constant 0 : index
    %c0_19 = arith.constant 0 : index
    %23 = vector.load %arg8[%c0_17, %c0_18, %c0_19] : memref<20x20x4xbf16, #tpu.memory_space<vmem>>, vector<16x16x4xbf16>
    %c0_20 = arith.constant 0 : index
    %c2_21 = arith.constant 2 : index
    %c0_22 = arith.constant 0 : index
    %24 = vector.load %arg8[%c0_20, %c2_21, %c0_22] : memref<20x20x4xbf16, #tpu.memory_space<vmem>>, vector<16x16x4xbf16>
    %c0_23 = arith.constant 0 : index
    %c4 = arith.constant 4 : index
    %c0_24 = arith.constant 0 : index
    %25 = vector.load %arg8[%c0_23, %c4, %c0_24] : memref<20x20x4xbf16, #tpu.memory_space<vmem>>, vector<16x16x4xbf16>
    %c2_25 = arith.constant 2 : index
    %c0_26 = arith.constant 0 : index
    %c0_27 = arith.constant 0 : index
    %26 = vector.load %arg8[%c2_25, %c0_26, %c0_27] : memref<20x20x4xbf16, #tpu.memory_space<vmem>>, vector<16x16x4xbf16>
    %c2_28 = arith.constant 2 : index
    %c2_29 = arith.constant 2 : index
    %c0_30 = arith.constant 0 : index
    %27 = vector.load %arg8[%c2_28, %c2_29, %c0_30] : memref<20x20x4xbf16, #tpu.memory_space<vmem>>, vector<16x16x4xbf16>
    %c2_31 = arith.constant 2 : index
    %c4_32 = arith.constant 4 : index
    %c0_33 = arith.constant 0 : index
    %28 = vector.load %arg8[%c2_31, %c4_32, %c0_33] : memref<20x20x4xbf16, #tpu.memory_space<vmem>>, vector<16x16x4xbf16>
    %c4_34 = arith.constant 4 : index
    %c0_35 = arith.constant 0 : index
    %c0_36 = arith.constant 0 : index
    %29 = vector.load %arg8[%c4_34, %c0_35, %c0_36] : memref<20x20x4xbf16, #tpu.memory_space<vmem>>, vector<16x16x4xbf16>
    %c4_37 = arith.constant 4 : index
    %c2_38 = arith.constant 2 : index
    %c0_39 = arith.constant 0 : index
    %30 = vector.load %arg8[%c4_37, %c2_38, %c0_39] : memref<20x20x4xbf16, #tpu.memory_space<vmem>>, vector<16x16x4xbf16>
    %c4_40 = arith.constant 4 : index
    %c4_41 = arith.constant 4 : index
    %c0_42 = arith.constant 0 : index
    %31 = vector.load %arg8[%c4_40, %c4_41, %c0_42] : memref<20x20x4xbf16, #tpu.memory_space<vmem>>, vector<16x16x4xbf16>
    %32 = tpu.concatenate %23, %24, %25, %26, %27, %28, %29, %30, %31 in 2 : vector<16x16x4xbf16>, vector<16x16x4xbf16>, vector<16x16x4xbf16>, vector<16x16x4xbf16>, vector<16x16x4xbf16>, vector<16x16x4xbf16>, vector<16x16x4xbf16>, vector<16x16x4xbf16>, vector<16x16x4xbf16> -> vector<16x16x36xbf16>
    %33 = vector.shape_cast %32 : vector<16x16x36xbf16> to vector<256x36xbf16>
    %c0_43 = arith.constant 0 : index
    %c0_44 = arith.constant 0 : index
    %34 = vector.load %arg3[%c0_43, %c0_44] : memref<36x4xbf16, #tpu.memory_space<vmem>>, vector<36x4xbf16>
    %cst_45 = arith.constant dense<0.000000e+00> : vector<256x4xf32>
    %35 = tpu.matmul %33, %34, %cst_45 {dimension_numbers = #tpu.dot_dimension_numbers<[1], [0], [0], [1], [0, 0, 1, 1], [], []>} : vector<256x36xbf16>, vector<36x4xbf16>, vector<256x4xf32> -> vector<256x4xf32>
    %c0_46 = arith.constant 0 : index
    %c0_47 = arith.constant 0 : index
    %36 = vector.load %arg4[%c0_46, %c0_47] : memref<1x4xf32, #tpu.memory_space<vmem>>, vector<1x4xf32>
    %37 = vector.shape_cast %36 : vector<1x4xf32> to vector<4xf32>
    %38 = vector.shape_cast %37 : vector<4xf32> to vector<1x4xf32>
    %39 = vector.broadcast %38 : vector<1x4xf32> to vector<256x4xf32>
    %40 = arith.addf %35, %39 : vector<256x4xf32>
    %cst_48 = arith.constant 0.000000e+00 : f32
    %41 = vector.broadcast %cst_48 : f32 to vector<256x4xf32>
    %42 = arith.maximumf %40, %41 : vector<256x4xf32>
    %43 = arith.truncf %42 : vector<256x4xf32> to vector<256x4xbf16>
    %c0_49 = arith.constant 0 : index
    %c0_50 = arith.constant 0 : index
    %44 = vector.load %arg5[%c0_49, %c0_50] : memref<4x4xbf16, #tpu.memory_space<vmem>>, vector<4x4xbf16>
    %cst_51 = arith.constant dense<0.000000e+00> : vector<256x4xf32>
    %45 = tpu.matmul %43, %44, %cst_51 {dimension_numbers = #tpu.dot_dimension_numbers<[1], [0], [0], [1], [0, 0, 1, 1], [], []>} : vector<256x4xbf16>, vector<4x4xbf16>, vector<256x4xf32> -> vector<256x4xf32>
    %c0_52 = arith.constant 0 : index
    %c0_53 = arith.constant 0 : index
    %46 = vector.load %arg6[%c0_52, %c0_53] : memref<1x4xf32, #tpu.memory_space<vmem>>, vector<1x4xf32>
    %47 = vector.shape_cast %46 : vector<1x4xf32> to vector<4xf32>
    %48 = vector.shape_cast %47 : vector<4xf32> to vector<1x4xf32>
    %49 = vector.broadcast %48 : vector<1x4xf32> to vector<256x4xf32>
    %50 = arith.addf %45, %49 : vector<256x4xf32>
    %51 = vector.shape_cast %4 : vector<16x16x4xf32> to vector<256x4xf32>
    %52 = arith.addf %51, %50 : vector<256x4xf32>
    %53 = vector.shape_cast %52 : vector<256x4xf32> to vector<16x16x4xf32>
    %c0_54 = arith.constant 0 : index
    %c0_55 = arith.constant 0 : index
    %c0_56 = arith.constant 0 : index
    %c0_57 = arith.constant 0 : index
    %54 = vector.load %arg7[%c0_54, %c0_55, %c0_56, %c0_57] : memref<1x16x16x4xf32, #tpu.memory_space<vmem>>, vector<1x16x16x4xf32>
    %55 = vector.shape_cast %54 : vector<1x16x16x4xf32> to vector<16x16x4xf32>
    %56 = vector.shape_cast %53 : vector<16x16x4xf32> to vector<1x16x16x4xf32>
    tpu.vector_store %arg7[%c0_54, %c0_55, %c0_56, %c0_57], %56 {strides = array<i32>} : memref<1x16x16x4xf32, #tpu.memory_space<vmem>>, vector<1x16x16x4xf32>,
    return
  }
  func.func @transform_0(%arg0: i32, %arg1: i32) -> (i32, i32, i32, i32) {
    %c0_i32 = arith.constant 0 : i32
    %c0_i32_0 = arith.constant 0 : i32
    %c0_i32_1 = arith.constant 0 : i32
    %c0_i32_2 = arith.constant 0 : i32
    return %arg0, %c0_i32, %c0_i32_0, %c0_i32_1 : i32, i32, i32, i32
  }
  func.func @transform_1(%arg0: i32, %arg1: i32) -> (i32, i32) {
    %c0_i32 = arith.constant 0 : i32
    %c0_i32_0 = arith.constant 0 : i32
    %c0_i32_1 = arith.constant 0 : i32
    return %c0_i32, %c0_i32_0 : i32, i32
  }
  func.func @transform_2(%arg0: i32, %arg1: i32) -> (i32, i32) {
    %c0_i32 = arith.constant 0 : i32
    %c0_i32_0 = arith.constant 0 : i32
    %c0_i32_1 = arith.constant 0 : i32
    return %c0_i32, %c0_i32_0 : i32, i32
  }
  func.func @transform_3(%arg0: i32, %arg1: i32) -> (i32, i32) {
    %c0_i32 = arith.constant 0 : i32
    %c0_i32_0 = arith.constant 0 : i32
    %c0_i32_1 = arith.constant 0 : i32
    return %c0_i32, %c0_i32_0 : i32, i32
  }
  func.func @transform_4(%arg0: i32, %arg1: i32) -> (i32, i32) {
    %c0_i32 = arith.constant 0 : i32
    %c0_i32_0 = arith.constant 0 : i32
    %c0_i32_1 = arith.constant 0 : i32
    return %c0_i32, %c0_i32_0 : i32, i32
  }
  func.func @transform_5(%arg0: i32, %arg1: i32) -> (i32, i32, i32, i32) {
    %c0_i32 = arith.constant 0 : i32
    %c0_i32_0 = arith.constant 0 : i32
    %c0_i32_1 = arith.constant 0 : i32
    return %arg0, %arg1, %c0_i32, %c0_i32_0 : i32, i32, i32, i32
  }
}

</mosaic_0001>

<bundles_post_ra>
// kernel: tpu_custom_call.1
= control target key start
LH: loop header
LB: loop body
LE: loop exit
PB: predicated region body
PF: predicated region fallthrough
CT: control target
= control target key end

     0   :  { %s4124_s18 = smov 0   ;;  %s4126_s19 = smov 0   ;;  %s5113_s0 = inlined_call_operand.vmem [shape: f32[2,16,16,4], index: 0, kind: input, shape index: {}]   ;;  %s5114_s1 = inlined_call_operand.vmem [shape: bf16[36,4], index: 1, kind: input, shape index: {}]   ;;  %s5115_s2 = inlined_call_operand.vmem [shape: f32[1,4], index: 2, kind: input, shape index: {}]   ;;  %s5116_s3 = inlined_call_operand.vmem [shape: bf16[4,4], index: 3, kind: input, shape index: {}]   ;;  %s5117_s4 = inlined_call_operand.vmem [shape: f32[1,4], index: 4, kind: input, shape index: {}]   ;;  %s5118_s5 = inlined_call_operand.vmem [shape: f32[2,16,16,4], index: 5, kind: output, shape index: {}]  }
   0x1   :  { %s4128_s20 = smov 0  }
   0x2 LB: > { %s27_s21 = sadd.s32 1, %s4079_s19  ;;  %p3304_p0 = scmp.ge.s32.totalorder %s4083_s20, 1  ;;  %s4083_s20 = sphi %s4128_s20, %s15_s20   ;;  %s4079_s19 = sphi %s4126_s19, %s5122_s19   ;;  %s4075_s18 = sphi %s4124_s18, %s5121_s18  }
   0x3   : > { %p29_p1 = scmp.ge.s32.totalorder %s27_s21, 2  ;;  %p201_p2 = scmp.lt.s32.totalorder %s4083_s20, 3 }
   0x5   : > { %s5124_s21 = smov (%p29_p1, %s27_s21), 0  ;;  %p202_p3 = pnand %p3304_p0, %p201_p2 }
   0x6   : > { %p234_p4 = scmp.lt.s32.totalorder (!%p202_p3), %s4075_s18, 1  ;;  %s4086_s26 = smov (!%p202_p3), 8  }
   0x7   : > { %205 = sbr.rel (%p202_p3) target bundleno = 820 (0x334), region = 40  ;;  %s4087_s27 = smov (!%p202_p3), 4  }
   0x8   : > { %s4088_s28 = smov (!%p202_p3), 12   ;;  %s4089_s29 = smov (!%p202_p3), 24  }
   0x9   : > { %s4090_s30 = smov (!%p202_p3), 16   ;;  %s4091_s6 = smov (!%p202_p3), 20  }
   0xa   : > { %s4092_s7 = smov (!%p202_p3), 28   ;;  %s4093_s8 = smov (!%p202_p3), 32  }
   0xc   : > { %vm286_vm0 = vcmask 24576   ;;  %vm556_vm1 = vcmask 27649   ;;  %vm558_vm2 = vcmask 27648   ;;  %v4085_v0 = vmov 0   ;;  %s5126_s18 = smov (!%p234_p4, %s4075_s18), 1 }
   0xd   : > { %610 = vst.msk [vmem:[#allocation2] sm:$0xe] %vm556_vm1, %v4085_v0  ;;  %613 = vst.msk [vmem:[#allocation2 + $0xc] sm:$0xe] %vm556_vm1, %v4085_v0  ;;  %s3636_s22 = sshll.u32 %s5126_s18, 8  ;;  %vm1359_vm3 = vcmask 1045504  }
   0xe   : > { %612 = vst.msk [vmem:[#allocation2 + $0x8] sm:$0x1] %vm286_vm0, %v4085_v0  ;;  %287 = vst.msk [vmem:[#allocation2] sm:$0x1] %vm286_vm0, %v4085_v0  ;;  %s4186_s25 = scalar_lea.vmem %s5113_s0, %s3636_s22  ;;  %vm1182_vm4 = vcmask 1046528   ;;  %vm424_vm5 = vcmask 1040384  }
   0xf   : > { %288 = vst.msk [vmem:[#allocation2 + $0xc] sm:$0x1] %vm286_vm0, %v4085_v0  ;;  %289 = vst.msk [vmem:[#allocation2 + $0x18] sm:$0x1] %vm286_vm0, %v4085_v0  ;;  %v256_v1 = vld [vmem:[%s4186_s25 + $0x10] sm:$0xff]  ;;  %v257_v2 = vld [vmem:[%s4186_s25 + $0x18] sm:$0xff] }
  0x10   : > { %290 = vst.msk [vmem:[#allocation2 + $0x24] sm:$0x1] %vm286_vm0, %v4085_v0  ;;  %291 = vst.msk [vmem:[#allocation2 + $0x30] sm:$0x1] %vm286_vm0, %v4085_v0  ;;  %vm425_vm6 = vcmask 1044484   ;;  %v254_v3 = vld [vmem:[%s4186_s25] sm:$0xff]  ;;  %v3640_v6 = vpack.c.bf16 %v256_v1, %v256_v1  ;;  %v3641_v7 = vpack.c.bf16 %v257_v2, %v257_v2 }
  0x11   : > { %292 = vst.msk [vmem:[#allocation2 + $0x3c] sm:$0x1] %vm286_vm0, %v4085_v0  ;;  %293 = vst.msk [vmem:[#allocation2 + $0x48] sm:$0x1] %vm286_vm0, %v4085_v0  ;;  %v255_v10 = vld [vmem:[%s4186_s25 + $0x8] sm:$0xff]  ;;  %v3638_v19 = vpack.c.bf16 %v254_v3, %v254_v3  ;;  %v260_v26 = vld [vmem:[%s4186_s25 + $0x30] sm:$0xff] }
  0x12   : > { %294 = vst.msk [vmem:[#allocation2 + $0x54] sm:$0x1] %vm286_vm0, %v4085_v0  ;;  %295 = vst.msk [vmem:[#allocation2 + $0x60] sm:$0x1] %vm286_vm0, %v4085_v0  ;;  %v432_v14 = vrot.slane %v3640_v6, 7  ;;  %v434_v18 = vrot.slane %v3641_v7, 7  ;;  %v3639_v20 = vpack.c.bf16 %v255_v10, %v255_v10  ;;  %v3644_v30 = vpack.c.bf16 %v260_v26, %v260_v26 }
  0x13   : > { %296 = vst.msk [vmem:[#allocation2 + $0x6c] sm:$0x1] %vm286_vm0, %v4085_v0  ;;  %297 = vst.msk [vmem:[#allocation2 + $0x78] sm:$0x1] %vm286_vm0, %v4085_v0  ;;  %v427_v38 = vrot.slane %v3638_v19, 7  ;;  %v261_v40 = vld [vmem:[%s4186_s25 + $0x38] sm:$0xff] }
  0x14   : > { %298 = vst.msk [vmem:[#allocation2 + $0x84] sm:$0x1] %vm286_vm0, %v4085_v0  ;;  %299 = vst.msk [vmem:[#allocation2 + $0x90] sm:$0x1] %vm286_vm0, %v4085_v0  ;;  %v781_v4 = vld [vmem:[#allocation2] sm:$0xc]  ;;  %v3645_v44 = vpack.c.bf16 %v261_v40, %v261_v40 }
  0x15   : > { %300 = vst.msk [vmem:[#allocation2 + $0x9c] sm:$0x1] %vm286_vm0, %v4085_v0  ;;  %301 = vst.msk [vmem:[#allocation2 + $0xa8] sm:$0x1] %vm286_vm0, %v4085_v0  ;;  %v749_v5 = vld [vmem:[#allocation2] sm:$0xe] }
  0x16   : > { %302 = vst.msk [vmem:[#allocation2 + $0xb4] sm:$0x1] %vm286_vm0, %v4085_v0  ;;  %303 = vst.msk [vmem:[#allocation2 + $0xc0] sm:$0x1] %vm286_vm0, %v4085_v0  ;;  %v783_v17 = vld [vmem:[#allocation2 + $0xc] sm:$0xc] }
  0x17   : > { %304 = vst.msk [vmem:[#allocation2 + $0xcc] sm:$0x1] %vm286_vm0, %v4085_v0  ;;  %305 = vst.msk [vmem:[#allocation2 + $0xd8] sm:$0x1] %vm286_vm0, %v4085_v0  ;;  %v751_v28 = vld [vmem:[#allocation2 + $0xc] sm:$0xe] }
  0x18   : > { %306 = vst.msk [vmem:[#allocation2 + $0xe4] sm:$0x1] %vm286_vm0, %v4085_v0  ;;  %615 = vst.msk [vmem:[#allocation2 + $0x14] sm:$0x1] %vm286_vm0, %v4085_v0  ;;  %v433_v29 = vrot.slane %v432_v14, 4  ;;  %v429_v39 = vrot.slane %v3639_v20, 7 }
  0x19   : > { %665 = vst.msk [vmem:[#allocation2 + $0xd8] sm:$0xe] %vm556_vm1, %v4085_v0  ;;  %668 = vst.msk [vmem:[#allocation2 + $0xe4] sm:$0xe] %vm556_vm1, %v4085_v0  ;;  %v258_v41 = vld [vmem:[%s4186_s25 + $0x20] sm:$0xff]  ;;  %v442_v45 = vrot.slane %v3644_v30, 7 }
  0x1a   : > { %667 = vst.msk [vmem:[#allocation2 + $0xe0] sm:$0x1] %vm286_vm0, %v4085_v0  ;;  %670 = vst.msk [vmem:[#allocation2 + $0xec] sm:$0x1] %vm286_vm0, %v4085_v0  ;;  %v259_v46 = vld [vmem:[%s4186_s25 + $0x28] sm:$0xff]  ;;  %v262_v47 = vld [vmem:[%s4186_s25 + $0x40] sm:$0xff]  ;;  %v3642_v50 = vpack.c.bf16 %v258_v41, %v258_v41 }
  0x1b   : > { %611 = vst.msk [vmem:[#allocation2 + $0x4] sm:$0xf] %vm558_vm2, %v4085_v0  ;;  %614 = vst.msk [vmem:[#allocation2 + $0x10] sm:$0xf] %vm558_vm2, %v4085_v0  ;;  %v428_v49 = vrot.slane %v427_v38, 4  ;;  %v3643_v51 = vpack.c.bf16 %v259_v46, %v259_v46  ;;  %v263_v52 = vld [vmem:[%s4186_s25 + $0x48] sm:$0xff]  ;;  %v3646_v61 = vpack.c.bf16 %v262_v47, %v262_v47 }
  0x1c   : > { %666 = vst.msk [vmem:[#allocation2 + $0xdc] sm:$0xf] %vm558_vm2, %v4085_v0  ;;  %669 = vst.msk [vmem:[#allocation2 + $0xe8] sm:$0xf] %vm558_vm2, %v4085_v0  ;;  %v443_v54 = vrot.slane %v442_v45, 4  ;;  %v444_v55 = vrot.slane %v3645_v44, 7  ;;  %v3647_v2 = vpack.c.bf16 %v263_v52, %v263_v52 }
  0x1d   : > { %v3822_v9 = vld [vmem:[#allocation2 + $0x8] ss:$0 sps:$4 sm:$0x33]   ;;  %vm4194_vm7 = vmor %vm424_vm5, %vm425_vm6  ;;  %561 = vst.msk [vmem:[#allocation2 + $0x24] sm:$0xe] %vm556_vm1, %v432_v14  ;;  %v436_v56 = vrot.slane %v434_v18, 4 }
  0x1e   : > { %v3823_v13 = vld [vmem:[#allocation2 + $0x8] ss:$0 sps:$4 sm:$0x11]   ;;  %v1361_v15 = vrot.slane %v3822_v9, 2  ;;  %v435_v37 = vsel %vm4194_vm7, %v433_v29, %v434_v18  ;;  %557 = vst.msk [vmem:[#allocation2 + $0x18] sm:$0xe] %vm556_vm1, %v427_v38  ;;  %v430_v58 = vsel %vm4194_vm7, %v428_v49, %v429_v39  ;;  %v445_v63 = vsel %vm4194_vm7, %v443_v54, %v444_v55 }
  0x1f   : > { %v1184_v23 = vrot.slane %v3823_v13, 1  ;;  %v3825_v27 = vld [vmem:[#allocation2 + $0x14] ss:$0 sps:$4 sm:$0x33]   ;;  %562 = vst.msk [vmem:[#allocation2 + $0x28] sm:$0xf] %vm558_vm2, %v435_v37 }
  0x20   : > { %v3827_v35 = vld [vmem:[#allocation2 + $0x14] ss:$0 sps:$4 sm:$0x11]   ;;  %v1364_v36 = vrot.slane %v3825_v27, 2  ;;  %567 = vst.msk [vmem:[#allocation2 + $0x3c] sm:$0xe] %vm556_vm1, %v442_v45 }
  0x21   : > { %v1187_v43 = vrot.slane %v3827_v35, 1  ;;  %v264_v57 = vld [vmem:[%s4186_s25 + $0x50] sm:$0xff]  ;;  %v437_v59 = vrot.slane %v3642_v50, 7  ;;  %v439_v60 = vrot.slane %v3643_v51, 7  ;;  %559 = vst.msk [vmem:[#allocation2 + $0x1c] sm:$0xf] %vm558_vm2, %v430_v58 }
  0x22   : > { %v718_v8 = vld [vmem:[#allocation2 + $0x4] sm:$0xf]  ;;  %v720_v16 = vld [vmem:[#allocation2 + $0x10] sm:$0xf]  ;;  %563 = vst.msk [vmem:[#allocation2 + $0x2c] sm:$0x1] %vm286_vm0, %v436_v56  ;;  %v3648_v7 = vpack.c.bf16 %v264_v57, %v264_v57 }
  0x23   : > { %v3405_v11 = vcombine.low %v781_v4, %v718_v8  ;;  %v3373_v12 = vcombine.low %v749_v5, %v718_v8  ;;  %v3407_v24 = vcombine.low %v783_v17, %v720_v16  ;;  %v3375_v34 = vcombine.low %v751_v28, %v720_v16  ;;  %568 = vst.msk [vmem:[#allocation2 + $0x40] sm:$0xf] %vm558_vm2, %v445_v63 }
  0x24   : > { %v815_v62 = vld [vmem:[#allocation2 + $0x24] sm:$0xf]  ;;  %v431_v0 = vrot.slane %v429_v39, 4  ;;  %v446_v1 = vrot.slane %v444_v55, 4  ;;  %v438_v3 = vrot.slane %v437_v59, 4  ;;  %v441_v5 = vrot.slane %v439_v60, 4 }
  0x25   : > { %v1360_v21 = vrot.slane %v3405_v11, 2  ;;  %v1183_v22 = vrot.slane %v3373_v12, 1  ;;  %v1363_v33 = vrot.slane %v3407_v24, 2  ;;  %v1186_v42 = vrot.slane %v3375_v34, 1  ;;  %564 = vst.msk [vmem:[#allocation2 + $0x30] sm:$0xe] %vm556_vm1, %v437_v59 }
  0x26   : > { %v847_v4 = vld [vmem:[#allocation2 + $0x24] sm:$0xe]  ;;  %v447_v6 = vrot.slane %v3646_v61, 7  ;;  %560 = vst.msk [vmem:[#allocation2 + $0x20] sm:$0x1] %vm286_vm0, %v431_v0  ;;  %v4229_v9 = vrot.slane %v3647_v2, 7  ;;  %v440_v11 = vsel %vm4194_vm7, %v438_v3, %v439_v60 }
  0x27   : > { %v1362_v31 = vsel %vm1359_vm3, %v1360_v21, %v1361_v15  ;;  %v1185_v32 = vsel %vm1182_vm4, %v1183_v22, %v1184_v23  ;;  %v1365_v48 = vsel %vm1359_vm3, %v1363_v33, %v1364_v36  ;;  %v1188_v53 = vsel %vm1182_vm4, %v1186_v42, %v1187_v43  ;;  %v879_v8 = vld [vmem:[#allocation2 + $0x24] sm:$0xc]  ;;  %569 = vst.msk [vmem:[#allocation2 + $0x44] sm:$0x1] %vm286_vm0, %v446_v1  ;;  %v816_v10 = vld [vmem:[#allocation2 + $0x28] sm:$0xf] }
  0x28   : > { %1408 = vrot.lane.b32.xlu1 %v1362_v31, %s4086_s26  ;;  %1231 = vrot.lane.b32.xlu0 %v1185_v32, %s4087_s27  ;;  %566 = vst.msk [vmem:[#allocation2 + $0x38] sm:$0x1] %vm286_vm0, %v441_v5  ;;  %v448_v12 = vrot.slane %v447_v6, 4  ;;  %v4235_v13 = vrot.slane %v3648_v7, 7  ;;  %v3438_v14 = vcombine.low %v815_v62, %v816_v10  ;;  %v3455_v15 = vcombine.low %v847_v4, %v816_v10  ;;  %v813_v16 = vld [vmem:[#allocation2 + $0x18] sm:$0xf] }
  0x29   : > { %570 = vst.msk [vmem:[#allocation2 + $0x48] sm:$0xe] %vm556_vm1, %v447_v6  ;;  %v845_v17 = vld [vmem:[#allocation2 + $0x18] sm:$0xe]  ;;  %v3487_v18 = vcombine.low %v879_v8, %v816_v10  ;;  %v912_v20 = vld [vmem:[#allocation2 + $0x3c] sm:$0xf] }
  0x2a   : > { %565 = vst.msk [vmem:[#allocation2 + $0x34] sm:$0xf] %vm558_vm2, %v440_v11  ;;  %v450_v19 = vsel %vm4194_vm7, %v448_v12, %v4229_v9  ;;  %v877_v21 = vld [vmem:[#allocation2 + $0x18] sm:$0xc]  ;;  %v814_v22 = vld [vmem:[#allocation2 + $0x1c] sm:$0xf] }
  0x2b   : > { %573 = vst.msk [vmem:[#allocation2 + $0x54] sm:$0xe] %vm556_vm1, %v4235_v13  ;;  %v944_v23 = vld [vmem:[#allocation2 + $0x3c] sm:$0xe]  ;;  %v3437_v24 = vcombine.low %v813_v16, %v814_v22  ;;  %v4245_v26 = vld [vmem:[#allocation2 + $0x40] sm:$0xf]  ;;  %v3453_v29 = vcombine.low %v845_v17, %v814_v22  ;;  %v3485_v39 = vcombine.low %v877_v21, %v814_v22 }
  0x2c   : > { %1410 = vrot.lane.b32.xlu1 %v1365_v48, %s4086_s26  ;;  %1233 = vrot.lane.b32.xlu0 %v1188_v53, %s4087_s27  ;;  %571 = vst.msk [vmem:[#allocation2 + $0x4c] sm:$0xf] %vm558_vm2, %v450_v19  ;;  %v910_v27 = vld [vmem:[#allocation2 + $0x30] sm:$0xf]  ;;  %v1651_v28 = vrot.slane %v3455_v15, 1  ;;  %v3518_v30 = vcombine.low %v912_v20, %v4245_v26  ;;  %v1827_v32 = vrot.slane %v3487_v18, 2  ;;  %v3535_v43 = vcombine.low %v944_v23, %v4245_v26 }
  0x2d   : > { %v3832_v31 = vld [vmem:[#allocation2 + $0x2c] ss:$0 sps:$4 sm:$0x11]   ;;  %v265_v33 = vld [vmem:[%s4186_s25 + $0x58] sm:$0xff]  ;;  %v1648_v35 = vrot.slane %v3453_v29, 1  ;;  %v1824_v54 = vrot.slane %v3485_v39, 2 }
  0x2e   : > { %v3833_v34 = vld [vmem:[#allocation2 + $0x20] ss:$0 sps:$4 sm:$0x11]   ;;  %v1652_v37 = vrot.slane %v3832_v31, 1  ;;  %v942_v44 = vld [vmem:[#allocation2 + $0x30] sm:$0xe]  ;;  %v3649_v52 = vpack.c.bf16 %v265_v33, %v265_v33 }
  0x2f   : > { %v3834_v38 = vld [vmem:[#allocation2 + $0x2c] ss:$0 sps:$4 sm:$0x33]   ;;  %v1649_v41 = vrot.slane %v3833_v34, 1  ;;  %v753_v45 = vld [vmem:[#allocation2 + $0x18] sm:$0xe] }
  0x30   : > { %1522 = vrot.lane.b32.xlu1 %v3438_v14, %s4088_s28  ;;  %1520 = vrot.lane.b32.xlu0 %v3437_v24, %s4088_s28  ;;  %v3835_v42 = vld [vmem:[#allocation2 + $0x20] ss:$0 sps:$4 sm:$0x33]   ;;  %v1653_v46 = vsel %vm1182_vm4, %v1651_v28, %v1652_v37  ;;  %v1828_v47 = vrot.slane %v3834_v38, 2  ;;  %v724_v49 = vld [vmem:[#allocation2 + $0x28] sm:$0xf] }
  0x31   : > { %v911_v36 = vld [vmem:[#allocation2 + $0x34] sm:$0xf]  ;;  %v3836_v48 = vld [vmem:[#allocation2 + $0x44] ss:$0 sps:$4 sm:$0x11]   ;;  %v1650_v53 = vsel %vm1182_vm4, %v1648_v35, %v1649_v41  ;;  %v1825_v55 = vrot.slane %v3835_v42, 2 }
  0x32   : > { %v3517_v40 = vcombine.low %v910_v27, %v911_v36  ;;  %v755_v50 = vld [vmem:[#allocation2 + $0x24] sm:$0xe]  ;;  %v3837_v51 = vld [vmem:[#allocation2 + $0x38] ss:$0 sps:$4 sm:$0x11]   ;;  %v3533_v56 = vcombine.low %v942_v44, %v911_v36  ;;  %v1829_v58 = vsel %vm1359_vm3, %v1827_v32, %v1828_v47  ;;  %v2115_v59 = vrot.slane %v3535_v43, 1 }
  0x33   : > { %v974_v57 = vld [vmem:[#allocation2 + $0x30] sm:$0xc]  ;;  %v2116_v60 = vrot.slane %v3836_v48, 1  ;;  %v4257_v61 = vld [vmem:[#allocation2 + $0x1c] sm:$0xf]  ;;  %v453_v1 = vrot.slane %v4235_v13, 4  ;;  %v3379_v5 = vcombine.low %v755_v50, %v724_v49  ;;  %v1826_v6 = vsel %vm1359_vm3, %v1824_v54, %v1825_v55 }
  0x34   : > { %1986 = vrot.lane.b32.xlu1 %v3518_v30, %s4089_s29  ;;  %1984 = vrot.lane.b32.xlu0 %v3517_v40, %s4089_s29  ;;  %v787_v62 = vld [vmem:[#allocation2 + $0x24] sm:$0xc]  ;;  %v3377_v63 = vcombine.low %v753_v45, %v4257_v61  ;;  %v3840_v0 = vld [vmem:[#allocation2 + $0x20] ss:$0 sps:$4 sm:$0x11]   ;;  %v3565_v3 = vcombine.low %v974_v57, %v911_v36  ;;  %v2112_v7 = vrot.slane %v3533_v56, 1 }
  0x35   : > { %v266_v2 = vld [vmem:[%s4186_s25 + $0x60] sm:$0xff]  ;;  %v976_v4 = vld [vmem:[#allocation2 + $0x3c] sm:$0xc]  ;;  %v2113_v8 = vrot.slane %v3837_v51, 1  ;;  %v454_v11 = vrot.slane %v3649_v52, 7  ;;  %v2117_v12 = vsel %vm1182_vm4, %v2115_v59, %v2116_v60  ;;  %v1190_v13 = vrot.slane %v3840_v0, 1 }
  0x36   : > { %v3838_v10 = vld [vmem:[#allocation2 + $0x38] ss:$0 sps:$4 sm:$0x33]   ;;  %v1189_v14 = vrot.slane %v3377_v63, 1  ;;  %v451_v16 = vrot.slane %v4229_v9, 4  ;;  %v3411_v17 = vcombine.low %v787_v62, %v724_v49  ;;  %v267_v19 = vld [vmem:[%s4186_s25 + $0x68] sm:$0xff]  ;;  %v3650_v22 = vpack.c.bf16 %v266_v2, %v266_v2 }
  0x37   : > { %v3843_v15 = vld [vmem:[#allocation2 + $0x2c] ss:$0 sps:$4 sm:$0x11]   ;;  %v455_v18 = vsel %vm4194_vm7, %v453_v1, %v454_v11  ;;  %v2288_v20 = vrot.slane %v3565_v3, 2  ;;  %v2114_v23 = vsel %vm1182_vm4, %v2112_v7, %v2113_v8  ;;  %v2289_v9 = vrot.slane %v3838_v10, 2  ;;  %v268_v41 = vld [vmem:[%s4186_s25 + $0x70] sm:$0xff] }
  0x38   : > { %1698 = vrot.lane.b32.xlu1 %v1653_v46, %s4090_s30  ;;  %1696 = vrot.lane.b32.xlu0 %v1650_v53, %s4090_s30  ;;  %v3841_v21 = vld [vmem:[#allocation2 + $0x44] ss:$0 sps:$4 sm:$0x33]   ;;  %574 = vst.msk [vmem:[#allocation2 + $0x58] sm:$0xf] %vm558_vm2, %v455_v18  ;;  %v3567_v24 = vcombine.low %v976_v4, %v4245_v26  ;;  %v1191_v29 = vsel %vm1182_vm4, %v1189_v14, %v1190_v13  ;;  %v1192_v30 = vrot.slane %v3379_v5, 1 }
  0x39   : > { %572 = vst.msk [vmem:[#allocation2 + $0x50] sm:$0x1] %vm286_vm0, %v451_v16  ;;  %v785_v27 = vld [vmem:[#allocation2 + $0x18] sm:$0xc]  ;;  %v1193_v31 = vrot.slane %v3843_v15, 1  ;;  %v456_v32 = vrot.slane %v454_v11, 4  ;;  %v3651_v34 = vpack.c.bf16 %v267_v19, %v267_v19  ;;  %v2290_v26 = vsel %vm1359_vm3, %v2288_v20, %v2289_v9 }
  0x3a   : > { %v3847_v28 = vld [vmem:[#allocation2 + $0x2c] ss:$0 sps:$4 sm:$0x33]   ;;  %v1369_v33 = vrot.slane %v3411_v17, 2  ;;  %v3409_v35 = vcombine.low %v785_v27, %v4257_v61  ;;  %v457_v37 = vrot.slane %v3650_v22, 7  ;;  %v2291_v38 = vrot.slane %v3567_v24, 2 }
  0x3b   : > { %v3845_v36 = vld [vmem:[#allocation2 + $0x20] ss:$0 sps:$4 sm:$0x33]   ;;  %575 = vst.msk [vmem:[#allocation2 + $0x5c] sm:$0x1] %vm286_vm0, %v456_v32  ;;  %v2292_v39 = vrot.slane %v3841_v21, 2  ;;  %v1194_v42 = vsel %vm1182_vm4, %v1192_v30, %v1193_v31  ;;  %v3652_v49 = vpack.c.bf16 %v268_v41, %v268_v41 }
  0x3c   : > { %1874 = vrot.lane.b32.xlu1 %v1829_v58, %s4091_s6  ;;  %1872 = vrot.lane.b32.xlu0 %v1826_v6, %s4091_s6  ;;  %v1370_v40 = vrot.slane %v3847_v28, 2  ;;  %v820_v43 = vld [vmem:[#allocation2 + $0x40] sm:$0xf]  ;;  %v851_v44 = vld [vmem:[#allocation2 + $0x3c] sm:$0xe]  ;;  %v459_v45 = vrot.slane %v3651_v34, 7 }
  0x3d   : > { %576 = vst.msk [vmem:[#allocation2 + $0x60] sm:$0xe] %vm556_vm1, %v457_v37  ;;  %v269_v46 = vld [vmem:[%s4186_s25 + $0x78] sm:$0xff]  ;;  %v1366_v47 = vrot.slane %v3409_v35, 2  ;;  %v1367_v48 = vrot.slane %v3845_v36, 2  ;;  %v2293_v50 = vsel %vm1359_vm3, %v2291_v38, %v2292_v39  ;;  %v3459_v51 = vcombine.low %v851_v44, %v820_v43  ;;  %v271_v27 = vld [vmem:[%s4186_s25 + $0x88] sm:$0xff] }
  0x3e   : > { %v3853_v52 = vld [vmem:[#allocation2 + $0x44] ss:$0 sps:$4 sm:$0x11]   ;;  %v458_v53 = vrot.slane %v457_v37, 4  ;;  %v1371_v54 = vsel %vm1359_vm3, %v1369_v33, %v1370_v40  ;;  %v818_v55 = vld [vmem:[#allocation2 + $0x34] sm:$0xf]  ;;  %v3653_v58 = vpack.c.bf16 %v269_v46, %v269_v46  ;;  %v3655_v39 = vpack.c.bf16 %v271_v27, %v271_v27 }
  0x3f   : > { %v819_v56 = vld [vmem:[#allocation2 + $0x3c] sm:$0xf]  ;;  %v849_v57 = vld [vmem:[#allocation2 + $0x30] sm:$0xe]  ;;  %v1368_v62 = vsel %vm1359_vm3, %v1366_v47, %v1367_v48  ;;  %v462_v0 = vrot.slane %v3652_v49, 7  ;;  %v1657_v4 = vrot.slane %v3459_v51, 1 }
  0x40   : > { %2162 = vrot.lane.b32.xlu1 %v2117_v12, %s4092_s7  ;;  %2160 = vrot.lane.b32.xlu0 %v2114_v23, %s4092_s7  ;;  %v817_v59 = vld [vmem:[#allocation2 + $0x30] sm:$0xf]  ;;  %v883_v60 = vld [vmem:[#allocation2 + $0x3c] sm:$0xc]  ;;  %v460_v61 = vsel %vm4194_vm7, %v458_v53, %v459_v45  ;;  %v3440_v1 = vcombine.low %v819_v56, %v820_v43  ;;  %v3457_v2 = vcombine.low %v849_v57, %v818_v55  ;;  %v1658_v5 = vrot.slane %v3853_v52, 1  ;;  %v270_v23 = vld [vmem:[%s4186_s25 + $0x80] sm:$0xff] }
  0x41   : > { %v881_v63 = vld [vmem:[#allocation2 + $0x30] sm:$0xc]  ;;  %577 = vst.msk [vmem:[#allocation2 + $0x64] sm:$0xf] %vm558_vm2, %v460_v61  ;;  %v3491_v6 = vcombine.low %v883_v60, %v820_v43  ;;  %v464_v8 = vrot.slane %v3653_v58, 7  ;;  %v3439_v12 = vcombine.low %v817_v59, %v818_v55  ;;  %v463_v14 = vrot.slane %v462_v0, 4 }
  0x42   : > { %v3851_v3 = vld [vmem:[#allocation2 + $0x38] ss:$0 sps:$4 sm:$0x11]   ;;  %v3857_v7 = vld [vmem:[#allocation2 + $0x44] ss:$0 sps:$4 sm:$0x33]   ;;  %v3489_v10 = vcombine.low %v881_v63, %v818_v55  ;;  %v1659_v16 = vsel %vm1182_vm4, %v1657_v4, %v1658_v5  ;;  %v3654_v35 = vpack.c.bf16 %v270_v23, %v270_v23 }
  0x43   : > { %579 = vst.msk [vmem:[#allocation2 + $0x6c] sm:$0xe] %vm556_vm1, %v462_v0  ;;  %v3855_v11 = vld [vmem:[#allocation2 + $0x38] ss:$0 sps:$4 sm:$0x33]   ;;  %v1654_v13 = vrot.slane %v3457_v2, 1  ;;  %v465_v21 = vsel %vm4194_vm7, %v463_v14, %v464_v8 }
  0x44   : > { %1235 = vrot.lane.b32.xlu1 %v1191_v29, %s4087_s27  ;;  %2336 = vrot.lane.b32.xlu0 %v2290_v26, %s4093_s8  ;;  %v1655_v15 = vrot.slane %v3851_v3, 1  ;;  %v4300_v17 = vld [vmem:[#allocation2 + $0x58] sm:$0xf]  ;;  %v948_v18 = vld [vmem:[#allocation2 + $0x54] sm:$0xe]  ;;  %v1833_v19 = vrot.slane %v3491_v6, 2 }
  0x45   : > { %v1834_v20 = vrot.slane %v3857_v7, 2  ;;  %v461_v22 = vrot.slane %v459_v45, 4  ;;  %v1830_v9 = vrot.slane %v3489_v10, 2  ;;  %v1831_v24 = vrot.slane %v3855_v11, 2  ;;  %580 = vst.msk [vmem:[#allocation2 + $0x70] sm:$0xf] %vm558_vm2, %v465_v21 }
  0x46   : > { %v272_v28 = vld [vmem:[%s4186_s25 + $0x90] sm:$0xff]  ;;  %v915_v29 = vld [vmem:[#allocation2 + $0x4c] sm:$0xf]  ;;  %v946_v30 = vld [vmem:[#allocation2 + $0x48] sm:$0xe]  ;;  %v3539_v31 = vcombine.low %v948_v18, %v4300_v17  ;;  %v1656_v32 = vsel %vm1182_vm4, %v1654_v13, %v1655_v15  ;;  %v466_v34 = vrot.slane %v464_v8, 4 }
  0x47   : > { %578 = vst.msk [vmem:[#allocation2 + $0x68] sm:$0x1] %vm286_vm0, %v461_v22  ;;  %v3861_v33 = vld [vmem:[#allocation2 + $0x5c] ss:$0 sps:$4 sm:$0x11]   ;;  %v1835_v36 = vsel %vm1359_vm3, %v1833_v19, %v1834_v20  ;;  %v3537_v40 = vcombine.low %v946_v30, %v915_v29  ;;  %v3656_v45 = vpack.c.bf16 %v272_v28, %v272_v28  ;;  %v1832_v46 = vsel %vm1359_vm3, %v1830_v9, %v1831_v24 }
  0x48   : > { %1237 = vrot.lane.b32.xlu1 %v1194_v42, %s4087_s27  ;;  %2338 = vrot.lane.b32.xlu0 %v2293_v50, %s4093_s8  ;;  %v916_v37 = vld [vmem:[#allocation2 + $0x54] sm:$0xf]  ;;  %v757_v38 = vld [vmem:[#allocation2 + $0x30] sm:$0xe]  ;;  %581 = vst.msk [vmem:[#allocation2 + $0x74] sm:$0x1] %vm286_vm0, %v466_v34 }
  0x49   : > { %v4314_v26 = vld [vmem:[#allocation2 + $0x34] sm:$0xf]  ;;  %v3860_v41 = vld [vmem:[#allocation2 + $0x50] ss:$0 sps:$4 sm:$0x11]   ;;  %v2121_v43 = vrot.slane %v3539_v31, 1  ;;  %v3520_v47 = vcombine.low %v916_v37, %v4300_v17 }
  0x4a   : > { %v914_v42 = vld [vmem:[#allocation2 + $0x48] sm:$0xf]  ;;  %v3381_v48 = vcombine.low %v757_v38, %v4314_v26  ;;  %v3864_v49 = vld [vmem:[#allocation2 + $0x38] ss:$0 sps:$4 sm:$0x11]   ;;  %v467_v51 = vrot.slane %v3654_v35, 7 }
  0x4b   : > { %v978_v44 = vld [vmem:[#allocation2 + $0x48] sm:$0xc]  ;;  %v728_v50 = vld [vmem:[#allocation2 + $0x40] sm:$0xf]  ;;  %v2122_v52 = vrot.slane %v3861_v33, 1  ;;  %v2118_v55 = vrot.slane %v3537_v40, 1  ;;  %v3519_v59 = vcombine.low %v914_v42, %v915_v29 }
  0x4c   : > { %1414 = vrot.lane.b32.xlu1 %v1371_v54, %s4086_s26  ;;  %1412 = vrot.lane.b32.xlu0 %v1368_v62, %s4086_s26  ;;  %v759_v53 = vld [vmem:[#allocation2 + $0x3c] sm:$0xe]  ;;  %v469_v54 = vrot.slane %v3655_v39, 7  ;;  %v2119_v56 = vrot.slane %v3860_v41, 1  ;;  %v468_v57 = vrot.slane %v467_v51, 4  ;;  %v3569_v60 = vcombine.low %v978_v44, %v915_v29 }
  0x4d   : > { %582 = vst.msk [vmem:[#allocation2 + $0x78] sm:$0xe] %vm556_vm1, %v467_v51  ;;  %v273_v58 = vld [vmem:[%s4186_s25 + $0x98] sm:$0xff]  ;;  %v3862_v61 = vld [vmem:[#allocation2 + $0x50] ss:$0 sps:$4 sm:$0x33]   ;;  %v2123_v3 = vsel %vm1182_vm4, %v2121_v43, %v2122_v52 }
  0x4e   : > { %v472_v62 = vrot.slane %v3656_v45, 7  ;;  %v1195_v63 = vrot.slane %v3381_v48, 1  ;;  %v980_v0 = vld [vmem:[#allocation2 + $0x54] sm:$0xc]  ;;  %v470_v2 = vsel %vm4194_vm7, %v468_v57, %v469_v54  ;;  %v1196_v4 = vrot.slane %v3864_v49, 1 }
  0x4f   : > { %v3867_v5 = vld [vmem:[#allocation2 + $0x44] ss:$0 sps:$4 sm:$0x11]   ;;  %v791_v6 = vld [vmem:[#allocation2 + $0x3c] sm:$0xc]  ;;  %v3657_v7 = vpack.c.bf16 %v273_v58, %v273_v58  ;;  %v2120_v8 = vsel %vm1182_vm4, %v2118_v55, %v2119_v56  ;;  %v2294_v10 = vrot.slane %v3569_v60, 2  ;;  %v3571_v14 = vcombine.low %v980_v0, %v4300_v17 }
  0x50   : > { %1526 = vrot.lane.b32.xlu1 %v3440_v1, %s4088_s28  ;;  %1524 = vrot.lane.b32.xlu0 %v3439_v12, %s4088_s28  ;;  %v3383_v1 = vcombine.low %v759_v53, %v728_v50  ;;  %583 = vst.msk [vmem:[#allocation2 + $0x7c] sm:$0xf] %vm558_vm2, %v470_v2  ;;  %v2295_v11 = vrot.slane %v3862_v61, 2  ;;  %v3865_v12 = vld [vmem:[#allocation2 + $0x5c] ss:$0 sps:$4 sm:$0x33]   ;;  %v1197_v19 = vsel %vm1182_vm4, %v1195_v63, %v1196_v4 }
  0x51   : > { %585 = vst.msk [vmem:[#allocation2 + $0x84] sm:$0xe] %vm556_vm1, %v472_v62  ;;  %v789_v15 = vld [vmem:[#allocation2 + $0x30] sm:$0xc]  ;;  %v473_v18 = vrot.slane %v472_v62, 4  ;;  %v1199_v20 = vrot.slane %v3867_v5, 1 }
  0x52   : > { %v1198_v13 = vrot.slane %v3383_v1, 1  ;;  %v3871_v21 = vld [vmem:[#allocation2 + $0x44] ss:$0 sps:$4 sm:$0x33]   ;;  %v474_v22 = vrot.slane %v3657_v7, 7  ;;  %v2296_v23 = vsel %vm1359_vm3, %v2294_v10, %v2295_v11  ;;  %v3413_v9 = vcombine.low %v789_v15, %v4314_v26 }
  0x53   : > { %v3869_v24 = vld [vmem:[#allocation2 + $0x38] ss:$0 sps:$4 sm:$0x33]   ;;  %v471_v27 = vrot.slane %v469_v54, 4  ;;  %v2297_v17 = vrot.slane %v3571_v14, 2  ;;  %v2298_v28 = vrot.slane %v3865_v12, 2 }
  0x54   : > { %1702 = vrot.lane.b32.xlu1 %v1659_v16, %s4090_s30  ;;  %1700 = vrot.lane.b32.xlu0 %v1656_v32, %s4090_s30  ;;  %v3415_v16 = vcombine.low %v791_v6, %v728_v50  ;;  %v475_v30 = vsel %vm4194_vm7, %v473_v18, %v474_v22  ;;  %v1200_v31 = vsel %vm1182_vm4, %v1198_v13, %v1199_v20  ;;  %v1376_v32 = vrot.slane %v3871_v21, 2  ;;  %v824_v33 = vld [vmem:[#allocation2 + $0x58] sm:$0xf]  ;;  %v855_v34 = vld [vmem:[#allocation2 + $0x54] sm:$0xe] }
  0x55   : > { %586 = vst.msk [vmem:[#allocation2 + $0x88] sm:$0xf] %vm558_vm2, %v475_v30  ;;  %v476_v35 = vrot.slane %v474_v22, 4  ;;  %v1373_v37 = vrot.slane %v3869_v24, 2  ;;  %v2299_v26 = vsel %vm1359_vm3, %v2297_v17, %v2298_v28  ;;  %v822_v38 = vld [vmem:[#allocation2 + $0x4c] sm:$0xf]  ;;  %v3463_v40 = vcombine.low %v855_v34, %v824_v33 }
  0x56   : > { %v1375_v29 = vrot.slane %v3415_v16, 2  ;;  %584 = vst.msk [vmem:[#allocation2 + $0x80] sm:$0x1] %vm286_vm0, %v471_v27  ;;  %v853_v39 = vld [vmem:[#allocation2 + $0x48] sm:$0xe]  ;;  %vm2708_vm8 = vcmask 1041408  }
  0x57   : > { %587 = vst.msk [vmem:[#allocation2 + $0x8c] sm:$0x1] %vm286_vm0, %v476_v35  ;;  %v823_v42 = vld [vmem:[#allocation2 + $0x54] sm:$0xf]  ;;  %v821_v45 = vld [vmem:[#allocation2 + $0x48] sm:$0xf] }
  0x58   : > { %1878 = vrot.lane.b32.xlu1 %v1835_v36, %s4091_s6  ;;  %1876 = vrot.lane.b32.xlu0 %v1832_v46, %s4091_s6  ;;  %v1372_v36 = vrot.slane %v3413_v9, 2  ;;  %v1377_v41 = vsel %vm1359_vm3, %v1375_v29, %v1376_v32  ;;  %v3877_v43 = vld [vmem:[#allocation2 + $0x5c] ss:$0 sps:$4 sm:$0x11]   ;;  %v887_v44 = vld [vmem:[#allocation2 + $0x54] sm:$0xc]  ;;  %v3461_v46 = vcombine.low %v853_v39, %v822_v38  ;;  %v3442_v49 = vcombine.low %v823_v42, %v824_v33 }
  0x59   : > { %v1663_v50 = vrot.slane %v3463_v40, 1  ;;  %v885_v51 = vld [vmem:[#allocation2 + $0x48] sm:$0xc]  ;;  %v1664_v52 = vrot.slane %v3877_v43, 1  ;;  %v3495_v53 = vcombine.low %v887_v44, %v824_v33  ;;  %v3441_v55 = vcombine.low %v821_v45, %v822_v38  ;;  %v4355_v60 = vld [vmem:[#allocation2 + $0x70] sm:$0xf] }
  0x5a   : > { %v1374_v48 = vsel %vm1359_vm3, %v1372_v36, %v1373_v37  ;;  %v3881_v54 = vld [vmem:[#allocation2 + $0x5c] ss:$0 sps:$4 sm:$0x33]   ;;  %v1660_v56 = vrot.slane %v3461_v46, 1  ;;  %v3493_v57 = vcombine.low %v885_v51, %v822_v38  ;;  %v952_v0 = vld [vmem:[#allocation2 + $0x6c] sm:$0xe] }
  0x5b   : > { %v1665_v61 = vsel %vm1182_vm4, %v1663_v50, %v1664_v52  ;;  %v1839_v62 = vrot.slane %v3495_v53, 2  ;;  %v1840_v63 = vrot.slane %v3881_v54, 2  ;;  %v919_v2 = vld [vmem:[#allocation2 + $0x64] sm:$0xf]  ;;  %v3543_v6 = vcombine.low %v952_v0, %v4355_v60  ;;  %v920_v10 = vld [vmem:[#allocation2 + $0x6c] sm:$0xf] }
  0x5c   : > { %1990 = vrot.lane.b32.xlu1 %v3520_v47, %s4089_s29  ;;  %1988 = vrot.lane.b32.xlu0 %v3519_v59, %s4089_s29  ;;  %v3875_v47 = vld [vmem:[#allocation2 + $0x50] ss:$0 sps:$4 sm:$0x11]   ;;  %v1836_v1 = vrot.slane %v3493_v57, 2  ;;  %v730_v11 = vld [vmem:[#allocation2 + $0x4c] sm:$0xf]  ;;  %v3522_v18 = vcombine.low %v920_v10, %v4355_v60 }
  0x5d   : > { %v1661_v58 = vrot.slane %v3875_v47, 1  ;;  %v3879_v59 = vld [vmem:[#allocation2 + $0x50] ss:$0 sps:$4 sm:$0x33]   ;;  %v761_v12 = vld [vmem:[#allocation2 + $0x48] sm:$0xe] }
  0x5e   : > { %v1837_v5 = vrot.slane %v3879_v59, 2  ;;  %v3885_v7 = vld [vmem:[#allocation2 + $0x74] ss:$0 sps:$4 sm:$0x11]   ;;  %v982_v13 = vld [vmem:[#allocation2 + $0x60] sm:$0xc]  ;;  %v3385_v21 = vcombine.low %v761_v12, %v730_v11 }
  0x5f   : > { %v1662_v4 = vsel %vm1182_vm4, %v1660_v56, %v1661_v58  ;;  %v918_v16 = vld [vmem:[#allocation2 + $0x60] sm:$0xf]  ;;  %v2127_v20 = vrot.slane %v3543_v6, 1  ;;  %v2128_v22 = vrot.slane %v3885_v7, 1  ;;  %v3573_v9 = vcombine.low %v982_v13, %v919_v2  ;;  %v732_v24 = vld [vmem:[#allocation2 + $0x58] sm:$0xf] }
  0x60   : > { %2166 = vrot.lane.b32.xlu1 %v2123_v3, %s4092_s7  ;;  %2164 = vrot.lane.b32.xlu0 %v2120_v8, %s4092_s7  ;;  %v950_v3 = vld [vmem:[#allocation2 + $0x60] sm:$0xe]  ;;  %v1841_v8 = vsel %vm1359_vm3, %v1839_v62, %v1840_v63  ;;  %v1838_v15 = vsel %vm1359_vm3, %v1836_v1, %v1837_v5  ;;  %v763_v27 = vld [vmem:[#allocation2 + $0x54] sm:$0xe]  ;;  %v3521_v17 = vcombine.low %v918_v16, %v919_v2  ;;  %v984_v32 = vld [vmem:[#allocation2 + $0x6c] sm:$0xc] }
  0x61   : > { %v3541_v14 = vcombine.low %v950_v3, %v919_v2  ;;  %v3886_v29 = vld [vmem:[#allocation2 + $0x68] ss:$0 sps:$4 sm:$0x33]   ;;  %v2129_v33 = vsel %vm1182_vm4, %v2127_v20, %v2128_v22  ;;  %v3387_v35 = vcombine.low %v763_v27, %v732_v24  ;;  %v3891_v36 = vld [vmem:[#allocation2 + $0x5c] ss:$0 sps:$4 sm:$0x11]   ;;  %v3575_v42 = vcombine.low %v984_v32, %v4355_v60 }
  0x62   : > { %v795_v37 = vld [vmem:[#allocation2 + $0x54] sm:$0xc]  ;;  %v2301_v38 = vrot.slane %v3886_v29, 2  ;;  %v3889_v39 = vld [vmem:[#allocation2 + $0x74] ss:$0 sps:$4 sm:$0x33]  }
  0x63   : > { %v2124_v28 = vrot.slane %v3541_v14, 1  ;;  %v793_v40 = vld [vmem:[#allocation2 + $0x48] sm:$0xc]  ;;  %v3419_v43 = vcombine.low %v795_v37, %v732_v24  ;;  %v3895_v44 = vld [vmem:[#allocation2 + $0x5c] ss:$0 sps:$4 sm:$0x33]  }
  0x64   : > { %1239 = vrot.lane.b32.xlu1 %v1197_v19, %s4087_s27  ;;  %2340 = vrot.lane.b32.xlu0 %v2296_v23, %s4093_s8  ;;  %v3884_v19 = vld [vmem:[#allocation2 + $0x68] ss:$0 sps:$4 sm:$0x11]   ;;  %v3888_v23 = vld [vmem:[#allocation2 + $0x50] ss:$0 sps:$4 sm:$0x11]  }
  0x65   : > { %v2125_v30 = vrot.slane %v3884_v19, 1  ;;  %v1202_v34 = vrot.slane %v3888_v23, 1  ;;  %v274_v45 = vld [vmem:[%s4186_s25 + $0xa0] sm:$0xff]  ;;  %v1204_v47 = vrot.slane %v3387_v35, 1  ;;  %v2303_v53 = vrot.slane %v3575_v42, 2  ;;  %v3923_v60 = vld [vmem:[%s5114_s1 + $0x8] sm:$0xff]  }
  0x66   : > { %v3893_v51 = vld [vmem:[#allocation2 + $0x50] ss:$0 sps:$4 sm:$0x33]   ;;  %v3658_v52 = vpack.c.bf16 %v274_v45, %v274_v45  ;;  %v2304_v54 = vrot.slane %v3889_v39, 2  ;;  %v1382_v56 = vrot.slane %v3895_v44, 2  ;;  %v275_v63 = vld [vmem:[%s4186_s25 + $0xa8] sm:$0xff] }
  0x67   : > { %v828_v58 = vld [vmem:[#allocation2 + $0x70] sm:$0xf]  ;;  %v859_v59 = vld [vmem:[#allocation2 + $0x6c] sm:$0xe]  ;;  %v4383_v62 = vld [vmem:[#allocation2 + $0x64] sm:$0xf]  ;;  %v3659_v13 = vpack.c.bf16 %v275_v63, %v275_v63 }
  0x68   : > { %1241 = vrot.lane.b32.xlu1 %v1200_v31, %s4087_s27  ;;  %2342 = vrot.lane.b32.xlu0 %v2299_v26, %s4093_s8  ;;  %v1201_v31 = vrot.slane %v3385_v21, 1  ;;  %v2300_v26 = vrot.slane %v3573_v9, 2  ;;  %v276_v0 = vld [vmem:[%s4186_s25 + $0xb0] sm:$0xff]  ;;  %v1379_v1 = vrot.slane %v3893_v51, 2  ;;  %v827_v2 = vld [vmem:[#allocation2 + $0x6c] sm:$0xf]  ;;  %v3467_v6 = vcombine.low %v859_v59, %v828_v58 }
  0x69   : > { %v3920_v3 = vld [vmem:[%s5114_s1 + $0x10] ss:$0 sps:$4 sm:$0x33]   ;;  %v857_v5 = vld [vmem:[#allocation2 + $0x60] sm:$0xe]  ;;  %v3660_v21 = vpack.c.bf16 %v276_v0, %v276_v0  ;;  %v3444_v23 = vcombine.low %v827_v2, %v828_v58  ;;  %vm2368_vm9 = vcmask 31744  }
  0x6a   : > { %v1203_v46 = vsel %vm1182_vm4, %v1201_v31, %v1202_v34  ;;  %v2302_v50 = vsel %vm1359_vm3, %v2300_v26, %v2301_v38  ;;  %v3901_v7 = vld [vmem:[#allocation2 + $0x74] ss:$0 sps:$4 sm:$0x11]   ;;  %3786 = vmatprep.subr.msk.bf16.mxu0 %vm2708_vm8, %v3920_v3  ;;  %v2710_v12 = vsel %vm2708_vm8, %v3920_v3, 0  ;;  %v3928_v14 = vld [vmem:[%s5114_s1] sm:$0xff]   ;;  %v3465_v19 = vcombine.low %v857_v5, %v4383_v62 }
  0x6b   : > { %3715 = vmatpush3.bf16.msra.mxu0 %v2710_v12  ;;  %v3899_v20 = vld [vmem:[#allocation2 + $0x68] ss:$0 sps:$4 sm:$0x11]   ;;  %v278_v22 = vld [vmem:[%s4186_s25 + $0xc0] sm:$0xff]  ;;  %v1669_v9 = vrot.slane %v3467_v6, 1  ;;  %v1670_v24 = vrot.slane %v3901_v7, 1 }
  0x6c   : > { %1418 = vrot.lane.b32.xlu1 %v1377_v41, %s4086_s26  ;;  %1416 = vrot.lane.b32.xlu0 %v1374_v48, %s4086_s26  ;;  %v2126_v41 = vsel %vm1182_vm4, %v2124_v28, %v2125_v30  ;;  %v1205_v48 = vrot.slane %v3891_v36, 1  ;;  %v889_v27 = vld [vmem:[#allocation2 + $0x60] sm:$0xc]  ;;  %v3905_v28 = vld [vmem:[#allocation2 + $0x74] ss:$0 sps:$4 sm:$0x33]   ;;  %v3662_v31 = vpack.c.bf16 %v278_v22, %v278_v22 }
  0x6d   : > { %3716 = vmatprep.subr.bf16.mxu0 %v3923_v60  ;;  %v3497_v34 = vcombine.low %v889_v27, %v4383_v62  ;;  %v3903_v35 = vld [vmem:[#allocation2 + $0x68] ss:$0 sps:$4 sm:$0x33]   ;;  %v479_v36 = vrot.slane %v3659_v13, 7  ;;  %v1667_v37 = vrot.slane %v3899_v20, 1  ;;  %v1671_v26 = vsel %vm1182_vm4, %v1669_v9, %v1670_v24 }
  0x6e   : > { %v1206_v57 = vsel %vm1182_vm4, %v1204_v47, %v1205_v48  ;;  %v4411_v39 = vld [vmem:[#allocation2 + $0x7c] sm:$0xf]  ;;  %v4413_v42 = vld [vmem:[#allocation2 + $0x88] sm:$0xf]  ;;  %v954_v47 = vld [vmem:[#allocation2 + $0x78] sm:$0xe] }
  0x6f   : > { %3717 = vmatpush3.bf16.msra.mxu0 %v3923_v60  ;;  %v481_v45 = vrot.slane %v479_v36, 4  ;;  %v956_v48 = vld [vmem:[#allocation2 + $0x84] sm:$0xe]  ;;  %v1842_v51 = vrot.slane %v3497_v34, 2  ;;  %v3545_v60 = vcombine.low %v954_v47, %v4411_v39  ;;  %v765_v63 = vld [vmem:[#allocation2 + $0x60] sm:$0xe] }
  0x70   : > { %1530 = vrot.lane.b32.xlu1 %v3442_v49, %s4088_s28  ;;  %1528 = vrot.lane.b32.xlu0 %v3441_v55, %s4088_s28  ;;  %v3417_v49 = vcombine.low %v793_v40, %v730_v11  ;;  %v1381_v55 = vrot.slane %v3419_v43, 2  ;;  %v891_v11 = vld [vmem:[#allocation2 + $0x6c] sm:$0xc]  ;;  %v482_v40 = vrot.slane %v3660_v21, 7  ;;  %v924_v59 = vld [vmem:[#allocation2 + $0x84] sm:$0xf] }
  0x71   : > { %3718 = vmatprep.subr.bf16.mxu0 %v3928_v14  ;;  %590 = vst.msk [vmem:[#allocation2 + $0x98] sm:$0x1] %vm286_vm0, %v481_v45  ;;  %v3908_v2 = vld [vmem:[#allocation2 + $0x80] ss:$0 sps:$4 sm:$0x11]   ;;  %v3524_v5 = vcombine.low %v924_v59, %v4413_v42  ;;  %vm2417_vm10 = vcmask 64512  }
  0x72   : > { %v1383_v10 = vsel %vm1359_vm3, %v1381_v55, %v1382_v56  ;;  %591 = vst.msk [vmem:[#allocation2 + $0x9c] sm:$0xe] %vm556_vm1, %v482_v40  ;;  %v3909_v55 = vld [vmem:[#allocation2 + $0x8c] ss:$0 sps:$4 sm:$0x11]   ;;  %v2131_v9 = vrot.slane %v3908_v2, 1 }
  0x73   : > { %3719 = vmatpush3.bf16.msra.mxu0 %v3928_v14  ;;  %v986_v6 = vld [vmem:[#allocation2 + $0x78] sm:$0xc]  ;;  %v2134_v14 = vrot.slane %v3909_v55, 1  ;;  %v3912_v13 = vld [vmem:[#allocation2 + $0x68] ss:$0 sps:$4 sm:$0x11]  }
  0x74   : > { %1706 = vrot.lane.b32.xlu1 %v1665_v61, %s4090_s30  ;;  %1704 = vrot.lane.b32.xlu0 %v1662_v4, %s4090_s30  ;;  %v1378_v61 = vrot.slane %v3417_v49, 2  ;;  %v2305_v4 = vsel %vm1359_vm3, %v2303_v53, %v2304_v54  ;;  %v483_v49 = vrot.slane %v482_v40, 4  ;;  %v1843_v54 = vrot.slane %v3903_v35, 2  ;;  %v3910_v21 = vld [vmem:[#allocation2 + $0x80] ss:$0 sps:$4 sm:$0x33]  }
  0x75   : > { %v3577_v20 = vcombine.low %v986_v6, %v4411_v39  ;;  %v988_v27 = vld [vmem:[#allocation2 + $0x84] sm:$0xc]  ;;  %v2307_v35 = vrot.slane %v3910_v21, 2  ;;  %v3919_v40 = vld [vmem:[#allocation2 + $0x74] ss:$0 sps:$4 sm:$0x33]  }
  0x76   : > { %v1380_v16 = vsel %vm1359_vm3, %v1378_v61, %v1379_v1  ;;  %v3547_v61 = vcombine.low %v956_v48, %v4413_v42  ;;  %v922_v1 = vld [vmem:[#allocation2 + $0x78] sm:$0xf]  ;;  %vm2450_vm11 = vcmask 97280   ;;  %vm2483_vm12 = vcmask 130048  }
  0x77   : > { %v2306_v34 = vrot.slane %v3577_v20, 2  ;;  %vm2516_vm13 = vcmask 162816   ;;  %vm2549_vm14 = vcmask 195584   ;;  %vm2582_vm15 = vcmask 228352  }
  0x78   : > { %1882 = vrot.lane.b32.xlu1 %v1841_v8, %s4091_s6  ;;  %1880 = vrot.lane.b32.xlu0 %v1838_v15, %s4091_s6  ;;  %v477_v8 = vrot.slane %v3658_v52, 7  ;;  %v277_v15 = vld [vmem:[%s4186_s25 + $0xb8] sm:$0xff]  ;;  %v2133_v12 = vrot.slane %v3547_v61, 1  ;;  %vm2615_vm5 = vcmask 261120   ;;  %vm2675_vm6 = vcmask 293888  }
  0x79   : > { %v3661_v29 = vpack.c.bf16 %v277_v15, %v277_v15  ;;  %v736_v15 = vld [vmem:[#allocation2 + $0x70] sm:$0xf] }
  0x7a   : > { %588 = vst.msk [vmem:[#allocation2 + $0x90] sm:$0xe] %vm556_vm1, %v477_v8  ;;  %v478_v30 = vrot.slane %v477_v8, 4 }
  0x7b   : > { %v484_v44 = vrot.slane %v3661_v29, 7 }
  0x7c   : > { %1994 = vrot.lane.b32.xlu1 %v3522_v18, %s4089_s29  ;;  %1992 = vrot.lane.b32.xlu0 %v3521_v17, %s4089_s29  ;;  %v825_v18 = vld [vmem:[#allocation2 + $0x60] sm:$0xf]  ;;  %v3499_v17 = vcombine.low %v891_v11, %v828_v58  ;;  %v480_v43 = vsel %vm4194_vm7, %v478_v30, %v479_v36  ;;  %v2130_v11 = vrot.slane %v3545_v60, 1  ;;  %v3915_v30 = vld [vmem:[#allocation2 + $0x74] ss:$0 sps:$4 sm:$0x11]   ;;  %v3579_v36 = vcombine.low %v988_v27, %v4413_v42 }
  0x7d   : > { %v3443_v32 = vcombine.low %v825_v18, %v4383_v62  ;;  %589 = vst.msk [vmem:[#allocation2 + $0x94] sm:$0xf] %vm558_vm2, %v480_v43  ;;  %v486_v52 = vrot.slane %v484_v44, 4  ;;  %v485_v56 = vsel %vm4194_vm7, %v483_v49, %v484_v44  ;;  %v4430_v62 = vld [vmem:[#allocation2 + $0x64] sm:$0xf]  ;;  %v3523_v18 = vcombine.low %v922_v1, %v4411_v39 }
  0x7e   : > { %v1845_v38 = vrot.slane %v3499_v17, 2  ;;  %592 = vst.msk [vmem:[#allocation2 + $0xa0] sm:$0xf] %vm558_vm2, %v485_v56  ;;  %v3389_v7 = vcombine.low %v765_v63, %v4430_v62  ;;  %v2135_v17 = vsel %vm1182_vm4, %v2133_v12, %v2134_v14  ;;  %v1211_v45 = vrot.slane %v3915_v30, 1  ;;  %v282_v63 = vld [vmem:[%s4186_s25 + $0xe0] sm:$0xff] }
  0x7f   : > { %593 = vst.msk [vmem:[#allocation2 + $0xa4] sm:$0x1] %vm286_vm0, %v486_v52  ;;  %v2308_v42 = vsel %vm1359_vm3, %v2306_v34, %v2307_v35  ;;  %v2309_v48 = vrot.slane %v3579_v36, 2  ;;  %v717_v1 = vld [vmem:[#allocation2] sm:$0xf] }
  0x80   : > { %2170 = vrot.lane.b32.xlu1 %v2129_v33, %s4092_s7  ;;  %2168 = vrot.lane.b32.xlu0 %v2126_v41, %s4092_s7  ;;  %v1666_v33 = vrot.slane %v3465_v19, 1  ;;  %v1846_v41 = vrot.slane %v3905_v28, 2  ;;  %v1207_v24 = vrot.slane %v3389_v7, 1  ;;  %v1208_v28 = vrot.slane %v3912_v13, 1  ;;  %v831_v12 = vld [vmem:[#allocation2 + $0x84] sm:$0xf] }
  0x81   : > { %v861_v14 = vld [vmem:[#allocation2 + $0x78] sm:$0xe]  ;;  %v3930_v35 = vld [vmem:[#allocation2 + $0x80] ss:$0 sps:$4 sm:$0x33]  }
  0x82   : > { %v1668_v53 = vsel %vm1182_vm4, %v1666_v33, %v1667_v37  ;;  %v1847_v58 = vsel %vm1359_vm3, %v1845_v38, %v1846_v41  ;;  %v3913_v37 = vld [vmem:[#allocation2 + $0x8c] ss:$0 sps:$4 sm:$0x33]   ;;  %v797_v38 = vld [vmem:[#allocation2 + $0x60] sm:$0xc]  ;;  %v1209_v43 = vsel %vm1182_vm4, %v1207_v24, %v1208_v28 }
  0x83   : > { %v3421_v49 = vcombine.low %v797_v38, %v4430_v62  ;;  %v719_v24 = vld [vmem:[#allocation2 + $0xc] sm:$0xf]  ;;  %v829_v28 = vld [vmem:[#allocation2 + $0x78] sm:$0xf]  ;;  %v865_v25 = vld [vmem:[#allocation2 + $0x90] sm:$0xe] }
  0x84   : > { %1243 = vrot.lane.b32.xlu1 %v1203_v46, %s4087_s27  ;;  %2344 = vrot.lane.b32.xlu0 %v2302_v50, %s4093_s8  ;;  %v279_v46 = vld [vmem:[%s4186_s25 + $0xc8] sm:$0xff]  ;;  %v487_v50 = vrot.slane %v3662_v31, 7 }
  0x85   : > { %v799_v31 = vld [vmem:[#allocation2 + $0x6c] sm:$0xc]  ;;  %v1384_v60 = vrot.slane %v3421_v49, 2  ;;  %v1849_v49 = vrot.slane %v3930_v35, 2 }
  0x86   : > { %594 = vst.msk [vmem:[#allocation2 + $0xa8] sm:$0xe] %vm556_vm1, %v487_v50  ;;  %v488_v3 = vrot.slane %v487_v50, 4  ;;  %v3423_v39 = vcombine.low %v799_v31, %v736_v15  ;;  %v3917_v50 = vld [vmem:[#allocation2 + $0x68] ss:$0 sps:$4 sm:$0x33]  }
  0x87   : > { %v1385_v61 = vrot.slane %v3917_v50, 2  ;;  %v3942_v35 = vld [vmem:[#allocation2 + $0x8c] ss:$0 sps:$4 sm:$0x11]  }
  0x88   : > { %1245 = vrot.lane.b32.xlu1 %v1206_v57, %s4087_s27  ;;  %2346 = vrot.lane.b32.xlu0 %v2305_v4, %s4093_s8  ;;  %v3663_v57 = vpack.c.bf16 %v279_v46, %v279_v46  ;;  %v1844_v4 = vsel %vm1359_vm3, %v1842_v51, %v1843_v54  ;;  %v281_v46 = vld [vmem:[%s4186_s25 + $0xd8] sm:$0xff]  ;;  %v2310_v51 = vrot.slane %v3913_v37, 2  ;;  %v1387_v52 = vrot.slane %v3423_v39, 2  ;;  %v3932_v37 = vld [vmem:[#allocation2 + $0x8c] ss:$0 sps:$4 sm:$0x33]  }
  0x89   : > { %v3665_v54 = vpack.c.bf16 %v281_v46, %v281_v46  ;;  %v1386_v27 = vsel %vm1359_vm3, %v1384_v60, %v1385_v61  ;;  %v1852_v50 = vrot.slane %v3932_v37, 2  ;;  %v4522_v60 = vld [vmem:[#allocation2 + $0x94] sm:$0xf]  ;;  %v958_v61 = vld [vmem:[#allocation2 + $0x90] sm:$0xe]  ;;  %v285_v37 = vld [vmem:[%s4186_s25 + $0xf8] sm:$0xff] }
  0x8a   : > { %v4441_v8 = vrot.slane %v3663_v57, 7  ;;  %v4475_v57 = vld [vmem:[#allocation2 + $0x88] sm:$0xf]  ;;  %v2311_v2 = vsel %vm1359_vm3, %v2309_v48, %v2310_v51 }
  0x8c   : > { %1422 = vrot.lane.b32.xlu1 %v1383_v10, %s4086_s26  ;;  %1420 = vrot.lane.b32.xlu0 %v1380_v16, %s4086_s26  ;;  %v767_v16 = vld [vmem:[#allocation2 + $0x6c] sm:$0xe]  ;;  %v490_v22 = vsel %vm4194_vm7, %v488_v3, %v4441_v8  ;;  %v491_v20 = vrot.slane %v4441_v8, 4 }
  0x8d   : > { %595 = vst.msk [vmem:[#allocation2 + $0xac] sm:$0xf] %vm558_vm2, %v490_v22  ;;  %v3391_v29 = vcombine.low %v767_v16, %v736_v15  ;;  %v893_v15 = vld [vmem:[#allocation2 + $0x78] sm:$0xc]  ;;  %v895_v16 = vld [vmem:[#allocation2 + $0x84] sm:$0xc]  ;;  %v3666_v22 = vpack.c.bf16 %v282_v63, %v282_v63 }
  0x8e   : > { %596 = vst.msk [vmem:[#allocation2 + $0xb0] sm:$0x1] %vm286_vm0, %v491_v20  ;;  %v3503_v36 = vcombine.low %v895_v16, %v4475_v57 }
  0x8f   : > { %v1210_v44 = vrot.slane %v3391_v29, 1  ;;  %v3446_v29 = vcombine.low %v831_v12, %v4475_v57  ;;  %v4500_v38 = vrot.slane %v3666_v22, 7  ;;  %v3935_v22 = vld [vmem:[#allocation2 + $0x98] ss:$0 sps:$4 sm:$0x11]  }
  0x90   : > { %1534 = vrot.lane.b32.xlu1 %v3444_v23, %s4088_s28  ;;  %1532 = vrot.lane.b32.xlu0 %v3443_v32, %s4088_s28  ;;  %v280_v23 = vld [vmem:[%s4186_s25 + $0xd0] sm:$0xff] }
  0x91   : > { %v3664_v32 = vpack.c.bf16 %v280_v23, %v280_v23  ;;  %v1212_v56 = vsel %vm1182_vm4, %v1210_v44, %v1211_v45  ;;  %v4017_v23 = vld [vmem:[#allocation2 + $0x4] sm:$0xf]  ;;  %600 = vst.msk [vmem:[#allocation2 + $0xc0] sm:$0xe] %vm556_vm1, %v4500_v38 }
  0x93   : > { %v492_v47 = vrot.slane %v3664_v32, 7 }
  0x94   : > { %1710 = vrot.lane.b32.xlu1 %v1671_v26, %s4090_s30  ;;  %1708 = vrot.lane.b32.xlu0 %v1668_v53, %s4090_s30  ;;  %v2132_v26 = vsel %vm1182_vm4, %v2130_v11, %v2131_v9  ;;  %v1388_v53 = vrot.slane %v3919_v40, 2  ;;  %v830_v11 = vld [vmem:[#allocation2 + $0x7c] sm:$0xf]  ;;  %v3357_v9 = vcombine.low %v717_v1, %v4017_v23  ;;  %v4018_v40 = vld [vmem:[#allocation2 + $0x10] sm:$0xf] }
  0x95   : > { %597 = vst.msk [vmem:[#allocation2 + $0xb4] sm:$0xe] %vm556_vm1, %v492_v47  ;;  %v493_v62 = vrot.slane %v492_v47, 4  ;;  %v3469_v30 = vcombine.low %v861_v14, %v830_v11  ;;  %v3501_v34 = vcombine.low %v893_v15, %v830_v11  ;;  %v3445_v44 = vcombine.low %v829_v28, %v830_v11  ;;  %v3936_v1 = vld [vmem:[#allocation2 + $0xa4] ss:$0 sps:$4 sm:$0x11]  }
  0x96   : > { %v1389_v7 = vsel %vm1359_vm3, %v1387_v52, %v1388_v53  ;;  %v4513_v53 = vld [vmem:[#allocation2 + $0xa0] sm:$0xf]  ;;  %v926_v14 = vld [vmem:[#allocation2 + $0x90] sm:$0xf]  ;;  %v740_v28 = vld [vmem:[#allocation2 + $0x88] sm:$0xf] }
  0x97   : > { %v1672_v45 = vrot.slane %v3469_v30, 1  ;;  %v1848_v48 = vrot.slane %v3501_v34, 2  ;;  %v990_v15 = vld [vmem:[#allocation2 + $0x90] sm:$0xc]  ;;  %v771_v30 = vld [vmem:[#allocation2 + $0x84] sm:$0xe] }
  0x98   : > { %1886 = vrot.lane.b32.xlu1 %v1847_v58, %s4091_s6  ;;  %1884 = vrot.lane.b32.xlu0 %v1844_v4, %s4091_s6  ;;  %v863_v58 = vld [vmem:[#allocation2 + $0x84] sm:$0xe]  ;;  %v3927_v4 = vld [vmem:[#allocation2 + $0x8c] ss:$0 sps:$4 sm:$0x11]  }
  0x99   : > { %v3471_v3 = vcombine.low %v863_v58, %v4475_v57  ;;  %v1676_v31 = vrot.slane %v3927_v4, 1  ;;  %v1850_v12 = vsel %vm1359_vm3, %v1848_v48, %v1849_v49  ;;  %v3939_v23 = vld [vmem:[#allocation2 + $0x80] ss:$0 sps:$4 sm:$0x11]   ;;  %v992_v48 = vld [vmem:[#allocation2 + $0x9c] sm:$0xc]  ;;  %v3395_v49 = vcombine.low %v771_v30, %v740_v28 }
  0x9a   : > { %v4434_v0 = vpop.permute.xlu1 %1408  ;;  %v4443_v10 = vpop.permute.xlu0 %1231  ;;  %v3937_v34 = vld [vmem:[#allocation2 + $0x98] ss:$0 sps:$4 sm:$0x33]   ;;  %v835_v30 = vld [vmem:[#allocation2 + $0x9c] sm:$0xf] }
  0x9b   : > { %v1675_v8 = vrot.slane %v3471_v3, 1  ;;  %v2371_v39 = vsel %vm2368_vm9, %v3357_v9, %v4443_v10  ;;  %v1851_v10 = vrot.slane %v3503_v36, 2  ;;  %v928_v3 = vld [vmem:[#allocation2 + $0x9c] sm:$0xf] }
  0x9c   : > { %1998 = vrot.lane.b32.xlu1 %v3524_v5, %s4089_s29  ;;  %1996 = vrot.lane.b32.xlu0 %v3523_v18, %s4089_s29  ;;  %v494_v5 = vrot.slane %v3665_v54, 7  ;;  %v2419_v51 = vsel %vm2417_vm10, %v2371_v39, %v4434_v0  ;;  %v960_v54 = vld [vmem:[#allocation2 + $0x9c] sm:$0xe] }
  0x9d   : > { %v1677_v47 = vsel %vm1182_vm4, %v1675_v8, %v1676_v31  ;;  %v3551_v4 = vcombine.low %v960_v54, %v4513_v53  ;;  %v284_v8 = vld [vmem:[%s4186_s25 + $0xf0] sm:$0xff]  ;;  %v3525_v31 = vcombine.low %v926_v14, %v4522_v60 }
  0x9e   : > { %v4447_v19 = vpop.permute.xlu1 %1410  ;;  %v4458_v33 = vpop.permute.xlu0 %1233  ;;  %v495_v18 = vsel %vm4194_vm7, %v493_v62, %v494_v5  ;;  %v496_v21 = vrot.slane %v494_v5, 4  ;;  %v769_v62 = vld [vmem:[#allocation2 + $0x78] sm:$0xe]  ;;  %v3668_v54 = vpack.c.bf16 %v284_v8, %v284_v8 }
  0x9f   : > { %598 = vst.msk [vmem:[#allocation2 + $0xb8] sm:$0xf] %vm558_vm2, %v495_v18  ;;  %v283_v18 = vld [vmem:[%s4186_s25 + $0xe8] sm:$0xff] }
  0xa0   : > { %2174 = vrot.lane.b32.xlu1 %v2135_v17, %s4092_s7  ;;  %2172 = vrot.lane.b32.xlu0 %v2132_v26, %s4092_s7  ;;  %v3925_v17 = vld [vmem:[#allocation2 + $0x80] ss:$0 sps:$4 sm:$0x11]   ;;  %599 = vst.msk [vmem:[#allocation2 + $0xbc] sm:$0x1] %vm286_vm0, %v496_v21  ;;  %v3549_v21 = vcombine.low %v958_v61, %v4522_v60  ;;  %v3667_v36 = vpack.c.bf16 %v283_v18, %v283_v18  ;;  %v498_v61 = vrot.slane %v4500_v38, 4 }
  0xa1   : > { %v1673_v46 = vrot.slane %v3925_v17, 1  ;;  %v2139_v17 = vrot.slane %v3551_v4, 1 }
  0xa2   : > { %v4463_v41 = vpop.permute.xlu1 %1522  ;;  %v4472_v55 = vpop.permute.xlu0 %1520  ;;  %v2136_v39 = vrot.slane %v3549_v21, 1 }
  0xa3   : > { %v2452_v58 = vsel %vm2450_vm11, %v2419_v51, %v4472_v55  ;;  %v1674_v63 = vsel %vm1182_vm4, %v1672_v45, %v1673_v46  ;;  %v1853_v55 = vsel %vm1359_vm3, %v1851_v10, %v1852_v50  ;;  %v3946_v51 = vld [vmem:[#allocation2 + $0x8c] ss:$0 sps:$4 sm:$0x33]  }
  0xa4   : > { %1247 = vrot.lane.b32.xlu1 %v1209_v43, %s4087_s27  ;;  %2348 = vrot.lane.b32.xlu0 %v2308_v42, %s4093_s8  ;;  %v3358_v43 = vcombine.low %v719_v24, %v4018_v40  ;;  %v2137_v40 = vrot.slane %v3935_v22, 1 }
  0xa6   : > { %v4477_v59 = vpop.permute.xlu1 %1986  ;;  %v4484_v6 = vpop.permute.xlu0 %1984  ;;  %v2374_v57 = vsel %vm2368_vm9, %v3358_v43, %v4458_v33 }
  0xa7   : > { %v2421_v5 = vsel %vm2417_vm10, %v2374_v57, %v4447_v19  ;;  %v3669_v57 = vpack.c.bf16 %v285_v37, %v285_v37  ;;  %v899_v37 = vld [vmem:[#allocation2 + $0x9c] sm:$0xc] }
  0xa8   : > { %1249 = vrot.lane.b32.xlu1 %v1212_v56, %s4087_s27  ;;  %2350 = vrot.lane.b32.xlu0 %v2311_v2, %s4093_s8  ;;  %v4515_v56 = vld [vmem:[#allocation2 + $0x7c] sm:$0xf]  ;;  %v2454_v11 = vsel %vm2450_vm11, %v2421_v5, %v4463_v41  ;;  %v3526_v41 = vcombine.low %v928_v3, %v4513_v53  ;;  %v1217_v3 = vrot.slane %v3942_v35, 1  ;;  %v721_v35 = vld [vmem:[#allocation2 + $0x18] sm:$0xf] }
  0xa9   : > { %v3393_v16 = vcombine.low %v769_v62, %v4515_v56  ;;  %v2138_v62 = vsel %vm1182_vm4, %v2136_v39, %v2137_v40  ;;  %v504_v14 = vrot.slane %v3669_v57, 7  ;;  %v3950_v39 = vld [vmem:[#allocation2 + $0x98] ss:$0 sps:$4 sm:$0x11]  }
  0xaa   : > { %v4487_v13 = vpop.permute.xlu1 %1698  ;;  %v1697_v32 = vpop.permute.xlu0 %1696 }
  0xab   : > { %v2485_v0 = vsel %vm2483_vm12, %v2452_v58, %v1697_v32  ;;  %v2487_v19 = vsel %vm2483_vm12, %v2454_v11, %v4487_v13  ;;  %v2140_v13 = vrot.slane %v3936_v1, 1  ;;  %v3581_v32 = vcombine.low %v990_v15, %v4522_v60  ;;  %v3944_v11 = vld [vmem:[#allocation2 + $0x80] ss:$0 sps:$4 sm:$0x33]  }
  0xac   : > { %1426 = vrot.lane.b32.xlu1 %v1389_v7, %s4086_s26  ;;  %1424 = vrot.lane.b32.xlu0 %v1386_v27, %s4086_s26  ;;  %v1213_v43 = vrot.slane %v3393_v16, 1  ;;  %v499_v1 = vrot.slane %v3667_v36, 7  ;;  %v1394_v16 = vrot.slane %v3946_v51, 2 }
  0xad   : > { %v2312_v58 = vrot.slane %v3581_v32, 2 }
  0xae   : > { %v1875_v26 = vpop.permute.xlu1 %1874  ;;  %v1873_v42 = vpop.permute.xlu0 %1872  ;;  %v500_v38 = vsel %vm4194_vm7, %v498_v61, %v499_v1  ;;  %v501_v18 = vrot.slane %v499_v1, 4  ;;  %v1679_v61 = vrot.slane %v3950_v39, 1 }
  0xaf   : > { %v2518_v2 = vsel %vm2516_vm13, %v2485_v0, %v1873_v42  ;;  %v2520_v9 = vsel %vm2516_vm13, %v2487_v19, %v1875_v26  ;;  %v1214_v42 = vrot.slane %v3939_v23, 1  ;;  %v3583_v0 = vcombine.low %v992_v48, %v4513_v53  ;;  %601 = vst.msk [vmem:[#allocation2 + $0xc4] sm:$0xf] %vm558_vm2, %v500_v38  ;;  %v836_v23 = vld [vmem:[#allocation2 + $0xa0] sm:$0xf] }
  0xb0   : > { %1538 = vrot.lane.b32.xlu1 %v3446_v29, %s4088_s28  ;;  %1536 = vrot.lane.b32.xlu0 %v3445_v44, %s4088_s28  ;;  %v2551_v20 = vsel %vm2549_vm14, %v2518_v2, %v4484_v6  ;;  %v2553_v26 = vsel %vm2549_vm14, %v2520_v9, %v4477_v59  ;;  %v803_v44 = vld [vmem:[#allocation2 + $0x84] sm:$0xc]  ;;  %v801_v59 = vld [vmem:[#allocation2 + $0x78] sm:$0xc]  ;;  %v867_v9 = vld [vmem:[#allocation2 + $0x9c] sm:$0xe]  ;;  %v3507_v48 = vcombine.low %v899_v37, %v836_v23 }
  0xb1   : > { %v3427_v60 = vcombine.low %v803_v44, %v740_v28  ;;  %v3425_v5 = vcombine.low %v801_v59, %v4515_v56  ;;  %v2315_v19 = vrot.slane %v3583_v0, 2  ;;  %602 = vst.msk [vmem:[#allocation2 + $0xc8] sm:$0x1] %vm286_vm0, %v501_v18  ;;  %v3475_v8 = vcombine.low %v867_v9, %v836_v23  ;;  %v4019_v59 = vld [vmem:[#allocation2 + $0x1c] sm:$0xf] }
  0xb2   : > { %v4511_v52 = vpop.permute.xlu1 %2162  ;;  %v2161_v33 = vpop.permute.xlu0 %2160  ;;  %v3359_v51 = vcombine.low %v721_v35, %v4019_v59  ;;  %v773_v9 = vld [vmem:[#allocation2 + $0x90] sm:$0xe] }
  0xb3   : > { %v2584_v24 = vsel %vm2582_vm15, %v2551_v20, %v2161_v33  ;;  %v2586_v45 = vsel %vm2582_vm15, %v2553_v26, %v4511_v52  ;;  %v2313_v52 = vrot.slane %v3937_v34, 2  ;;  %v1215_v33 = vsel %vm1182_vm4, %v1213_v43, %v1214_v42  ;;  %v3952_v34 = vld [vmem:[#allocation2 + $0xa4] ss:$0 sps:$4 sm:$0x11]   ;;  %v833_v26 = vld [vmem:[#allocation2 + $0x90] sm:$0xf] }
  0xb4   : > { %1714 = vrot.lane.b32.xlu1 %v1677_v47, %s4090_s30  ;;  %1712 = vrot.lane.b32.xlu0 %v1674_v63, %s4090_s30  ;;  %v2141_v47 = vsel %vm1182_vm4, %v2139_v17, %v2140_v13  ;;  %v3940_v63 = vld [vmem:[#allocation2 + $0xa4] ss:$0 sps:$4 sm:$0x33]   ;;  %v1393_v15 = vrot.slane %v3427_v60, 2  ;;  %v1390_v17 = vrot.slane %v3425_v5, 2  ;;  %v1391_v13 = vrot.slane %v3944_v11, 2 }
  0xb5   : > { %v2314_v53 = vsel %vm1359_vm3, %v2312_v58, %v2313_v52  ;;  %v2316_v20 = vrot.slane %v3940_v63, 2  ;;  %v3448_v43 = vcombine.low %v835_v30, %v836_v23  ;;  %v1682_v42 = vrot.slane %v3952_v34, 1  ;;  %v3954_v58 = vld [vmem:[#allocation2 + $0x98] ss:$0 sps:$4 sm:$0x33]  }
  0xb6   : > { %v4532_v7 = vpop.permute.xlu1 %1235  ;;  %v2337_v27 = vpop.permute.xlu0 %2336  ;;  %v1395_v32 = vsel %vm1359_vm3, %v1393_v15, %v1394_v16  ;;  %v1392_v40 = vsel %vm1359_vm3, %v1390_v17, %v1391_v13  ;;  %v723_v52 = vld [vmem:[#allocation2 + $0x24] sm:$0xf]  ;;  %v1857_v63 = vrot.slane %v3507_v48, 2  ;;  %v4020_v11 = vld [vmem:[#allocation2 + $0x28] sm:$0xf] }
  0xb7   : > { %v2617_v29 = vsel %vm2615_vm5, %v2584_v24, %v2337_v27  ;;  %v2317_v28 = vsel %vm1359_vm3, %v2315_v19, %v2316_v20  ;;  %v2377_v5 = vsel %vm2368_vm9, %v3359_v51, %v4532_v7  ;;  %v3360_v38 = vcombine.low %v723_v52, %v4020_v11  ;;  %v962_v15 = vld [vmem:[#allocation2 + $0xa8] sm:$0xe]  ;;  %v932_v19 = vld [vmem:[#allocation2 + $0xb4] sm:$0xf] }
  0xb8   : > { %1890 = vrot.lane.b32.xlu1 %v1853_v55, %s4091_s6  ;;  %3720 = vmatprep.mubr.msk.bf16.mxu0 %vm2675_vm6, %v2617_v29  ;;  %v1216_v55 = vrot.slane %v3395_v49, 1  ;;  %v834_v29 = vld [vmem:[#allocation2 + $0x94] sm:$0xf]  ;;  %v3956_v49 = vld [vmem:[#allocation2 + $0xa4] ss:$0 sps:$4 sm:$0x33]  }
  0xb9   : > { %1888 = vrot.lane.b32.xlu0 %v1850_v12, %s4091_s6  ;;  %v502_v12 = vrot.slane %v3668_v54, 7  ;;  %v3473_v44 = vcombine.low %v865_v25, %v834_v29  ;;  %v3447_v54 = vcombine.low %v833_v26, %v834_v29  ;;  %v1858_v1 = vrot.slane %v3956_v49, 2  ;;  %v4619_v20 = vld [vmem:[#allocation2 + $0x94] sm:$0xf]  ;;  %v994_v25 = vld [vmem:[#allocation2 + $0xa8] sm:$0xc] }
  0xba   : > { %v4550_v6 = vpop.permute.xlu1 %1237  ;;  %v2339_v46 = vpop.permute.xlu0 %2338  ;;  %v1218_v22 = vsel %vm1182_vm4, %v1216_v55, %v1217_v3  ;;  %v4610_v55 = vld [vmem:[#allocation2 + $0xb8] sm:$0xf]  ;;  %v964_v3 = vld [vmem:[#allocation2 + $0xb4] sm:$0xe] }
  0xbb   : > { %v2619_v10 = vsel %vm2615_vm5, %v2586_v45, %v2339_v46  ;;  %v503_v56 = vrot.slane %v502_v12, 4  ;;  %603 = vst.msk [vmem:[#allocation2 + $0xcc] sm:$0xe] %vm556_vm1, %v502_v12  ;;  %v1681_v45 = vrot.slane %v3475_v8, 1  ;;  %v897_v46 = vld [vmem:[#allocation2 + $0x90] sm:$0xc]  ;;  %v2380_v17 = vsel %vm2368_vm9, %v3360_v38, %v4550_v6 }
  0xbc   : > { %2002 = vrot.lane.b32.xlu1 %v3526_v41, %s4089_s29  ;;  %3721 = vmatmul.mubr.msk.bf16.vlgmr.msra.gmra.mxu0 %vm2675_vm6, %v2619_v10  ;;  %v506_v41 = vrot.slane %v504_v14, 4  ;;  %v3505_v57 = vcombine.low %v897_v46, %v834_v29  ;;  %v1678_v60 = vrot.slane %v3473_v44, 1  ;;  %v3960_v23 = vld [vmem:[#allocation2 + $0xbc] ss:$0 sps:$4 sm:$0x11]   ;;  %v3397_v6 = vcombine.low %v773_v9, %v4619_v20 }
  0xbd   : > { %2000 = vrot.lane.b32.xlu0 %v3525_v31, %s4089_s29  ;;  %v505_v27 = vsel %vm4194_vm7, %v503_v56, %v504_v14  ;;  %v1683_v0 = vsel %vm1182_vm4, %v1681_v45, %v1682_v42  ;;  %v1855_v14 = vrot.slane %v3954_v58, 2  ;;  %v2146_v39 = vrot.slane %v3960_v23, 1  ;;  %v4647_v45 = vld [vmem:[#allocation2 + $0xa0] sm:$0xf]  ;;  %v775_v46 = vld [vmem:[#allocation2 + $0x9c] sm:$0xe] }
  0xbe   : > { %v4565_v50 = vpop.permute.xlu1 %1414  ;;  %v4573_v2 = vpop.permute.xlu0 %1412  ;;  %605 = vst.msk [vmem:[#allocation2 + $0xd4] sm:$0x1] %vm286_vm0, %v506_v41  ;;  %v1854_v12 = vrot.slane %v3505_v57, 2  ;;  %v1680_v18 = vsel %vm1182_vm4, %v1678_v60, %v1679_v61  ;;  %v1859_v41 = vsel %vm1359_vm3, %v1857_v63, %v1858_v1  ;;  %v996_v48 = vld [vmem:[#allocation2 + $0xb4] sm:$0xc]  ;;  %v3399_v60 = vcombine.low %v775_v46, %v4647_v45 }
  0xbf   : > { %604 = vst.msk [vmem:[#allocation2 + $0xd0] sm:$0xf] %vm558_vm2, %v505_v27  ;;  %v2423_v16 = vsel %vm2417_vm10, %v2377_v5, %v4573_v2  ;;  %v2425_v30 = vsel %vm2417_vm10, %v2380_v17, %v4565_v50  ;;  %v3961_v51 = vld [vmem:[#allocation2 + $0xb0] ss:$0 sps:$4 sm:$0x33]   ;;  %v3587_v5 = vcombine.low %v996_v48, %v4610_v55 }
  0xc0   : > { %2178 = vrot.lane.b32.xlu1 %v2141_v47, %s4092_s7  ;;  %v3966_v61 = vld [vmem:[#allocation2 + $0xa4] ss:$0 sps:$4 sm:$0x11]   ;;  %v805_v1 = vld [vmem:[#allocation2 + $0x90] sm:$0xc] }
  0xc1   : > { %2176 = vrot.lane.b32.xlu0 %v2138_v62, %s4092_s7  ;;  %v3964_v11 = vld [vmem:[#allocation2 + $0xbc] ss:$0 sps:$4 sm:$0x33]  }
  0xc2   : > { %v4576_v4 = vpop.permute.xlu1 %1526  ;;  %v4586_v21 = vpop.permute.xlu0 %1524 }
  0xc3   : > { %v2456_v7 = vsel %vm2450_vm11, %v2423_v16, %v4586_v21  ;;  %v1856_v21 = vsel %vm1359_vm3, %v1854_v12, %v1855_v14  ;;  %v2458_v34 = vsel %vm2450_vm11, %v2425_v30, %v4576_v4  ;;  %v1222_v14 = vrot.slane %v3399_v60, 1  ;;  %v3970_v16 = vld [vmem:[#allocation2 + $0xa4] ss:$0 sps:$4 sm:$0x33]   ;;  %v727_v60 = vld [vmem:[#allocation2 + $0x3c] sm:$0xf] }
  0xc4   : > { %1251 = vrot.lane.b32.xlu1 %v1215_v33, %s4087_s27 }
  0xc5   : > { %2352 = vrot.lane.b32.xlu0 %v2314_v53, %s4093_s8  ;;  %v931_v53 = vld [vmem:[#allocation2 + $0xac] sm:$0xf] }
  0xc6   : > { %v4590_v24 = vpop.permute.xlu1 %1702  ;;  %v1701_v31 = vpop.permute.xlu0 %1700  ;;  %v3553_v29 = vcombine.low %v962_v15, %v931_v53  ;;  %v3585_v42 = vcombine.low %v994_v25, %v931_v53 }
  0xc7   : > { %v2489_v27 = vsel %vm2483_vm12, %v2456_v7, %v1701_v31  ;;  %v3528_v31 = vcombine.low %v932_v19, %v4610_v55  ;;  %v2491_v50 = vsel %vm2483_vm12, %v2458_v34, %v4590_v24  ;;  %v2321_v7 = vrot.slane %v3587_v5, 2  ;;  %v4696_v5 = vld [vmem:[#allocation2 + $0xd0] sm:$0xf] }
  0xc8   : > { %1253 = vrot.lane.b32.xlu1 %v1218_v22, %s4087_s27  ;;  %v3555_v22 = vcombine.low %v964_v3, %v4610_v55  ;;  %v2142_v49 = vrot.slane %v3553_v29, 1  ;;  %v2318_v63 = vrot.slane %v3585_v42, 2  ;;  %v2319_v3 = vrot.slane %v3961_v51, 2 }
  0xc9   : > { %2354 = vrot.lane.b32.xlu0 %v2317_v28, %s4093_s8  ;;  %v930_v28 = vld [vmem:[#allocation2 + $0xa8] sm:$0xf]  ;;  %v2322_v55 = vrot.slane %v3964_v11, 2  ;;  %v968_v11 = vld [vmem:[#allocation2 + $0xcc] sm:$0xe] }
  0xca   : > { %v4600_v36 = vpop.permute.xlu1 %1878  ;;  %v1877_v47 = vpop.permute.xlu0 %1876  ;;  %v2145_v26 = vrot.slane %v3555_v22, 1  ;;  %v3527_v4 = vcombine.low %v930_v28, %v931_v53  ;;  %v1223_v53 = vrot.slane %v3966_v61, 1  ;;  %v2320_v19 = vsel %vm1359_vm3, %v2318_v63, %v2319_v3 }
  0xcb   : > { %v2522_v13 = vsel %vm2516_vm13, %v2489_v27, %v1877_v47  ;;  %v2524_v47 = vsel %vm2516_vm13, %v2491_v50, %v4600_v36  ;;  %v1400_v27 = vrot.slane %v3970_v16, 2  ;;  %v2323_v28 = vsel %vm1359_vm3, %v2321_v7, %v2322_v55 }
  0xcc   : > { %1430 = vrot.lane.b32.xlu1 %v1395_v32, %s4086_s26  ;;  %v3959_v32 = vld [vmem:[#allocation2 + $0xb0] ss:$0 sps:$4 sm:$0x11]   ;;  %v2147_v36 = vsel %vm1182_vm4, %v2145_v26, %v2146_v39  ;;  %v1224_v23 = vsel %vm1182_vm4, %v1222_v14, %v1223_v53  ;;  %v903_v26 = vld [vmem:[#allocation2 + $0xb4] sm:$0xc] }
  0xcd   : > { %1428 = vrot.lane.b32.xlu0 %v1392_v40, %s4086_s26  ;;  %v3963_v40 = vld [vmem:[#allocation2 + $0x98] ss:$0 sps:$4 sm:$0x11]   ;;  %v2143_v59 = vrot.slane %v3959_v32, 1  ;;  %v725_v39 = vld [vmem:[#allocation2 + $0x30] sm:$0xf] }
  0xce   : > { %v4605_v10 = vpop.permute.xlu1 %1990  ;;  %v1989_v62 = vpop.permute.xlu0 %1988  ;;  %v1220_v52 = vrot.slane %v3963_v40, 1  ;;  %v837_v40 = vld [vmem:[#allocation2 + $0xa8] sm:$0xf]  ;;  %v4022_v14 = vld [vmem:[#allocation2 + $0x40] sm:$0xf] }
  0xcf   : > { %v2555_v8 = vsel %vm2549_vm14, %v2522_v13, %v1989_v62  ;;  %v2557_v24 = vsel %vm2549_vm14, %v2524_v47, %v4605_v10  ;;  %v807_v10 = vld [vmem:[#allocation2 + $0x9c] sm:$0xc]  ;;  %v840_v13 = vld [vmem:[#allocation2 + $0xb8] sm:$0xf]  ;;  %v3362_v53 = vcombine.low %v727_v60, %v4022_v14 }
  0xd0   : > { %1542 = vrot.lane.b32.xlu1 %v3448_v43, %s4088_s28  ;;  %v3431_v15 = vcombine.low %v807_v10, %v4647_v45  ;;  %v3974_v47 = vld [vmem:[#allocation2 + $0xb0] ss:$0 sps:$4 sm:$0x11]  }
  0xd1   : > { %1540 = vrot.lane.b32.xlu0 %v3447_v54, %s4088_s28  ;;  %v1219_v54 = vrot.slane %v3397_v6, 1  ;;  %v869_v6 = vld [vmem:[#allocation2 + $0xa8] sm:$0xe] }
  0xd2   : > { %v2167_v33 = vpop.permute.xlu1 %2166  ;;  %v2165_v56 = vpop.permute.xlu0 %2164  ;;  %v1399_v9 = vrot.slane %v3431_v15, 2 }
  0xd3   : > { %v2588_v35 = vsel %vm2582_vm15, %v2555_v8, %v2165_v56  ;;  %v2590_v57 = vsel %vm2582_vm15, %v2557_v24, %v2167_v33  ;;  %v2144_v33 = vsel %vm1182_vm4, %v2142_v49, %v2143_v59  ;;  %v1221_v12 = vsel %vm1182_vm4, %v1219_v54, %v1220_v52  ;;  %v838_v8 = vld [vmem:[#allocation2 + $0xac] sm:$0xf]  ;;  %v3980_v59 = vld [vmem:[#allocation2 + $0xbc] ss:$0 sps:$4 sm:$0x33]  }
  0xd4   : > { %1718 = vrot.lane.b32.xlu1 %v1683_v0, %s4090_s30  ;;  %v3429_v56 = vcombine.low %v805_v1, %v4619_v20  ;;  %v1401_v25 = vsel %vm1359_vm3, %v1399_v9, %v1400_v27  ;;  %v3477_v46 = vcombine.low %v869_v6, %v838_v8  ;;  %v3511_v49 = vcombine.low %v903_v26, %v840_v13  ;;  %v4021_v54 = vld [vmem:[#allocation2 + $0x34] sm:$0xf]  ;;  %v3978_v52 = vld [vmem:[#allocation2 + $0xb0] ss:$0 sps:$4 sm:$0x33]  }
  0xd5   : > { %1716 = vrot.lane.b32.xlu0 %v1680_v18, %s4090_s30  ;;  %v1861_v16 = vrot.slane %v3978_v52, 2  ;;  %v998_v26 = vld [vmem:[#allocation2 + $0xc0] sm:$0xc] }
  0xd6   : > { %v4626_v2 = vpop.permute.xlu1 %1239  ;;  %v2341_v37 = vpop.permute.xlu0 %2340  ;;  %v1396_v29 = vrot.slane %v3429_v56, 2  ;;  %v1684_v61 = vrot.slane %v3477_v46, 1  ;;  %v1863_v1 = vrot.slane %v3511_v49, 2  ;;  %v935_v56 = vld [vmem:[#allocation2 + $0xc4] sm:$0xf] }
  0xd7   : > { %v2621_v43 = vsel %vm2615_vm5, %v2588_v35, %v2341_v37  ;;  %v3976_v35 = vld [vmem:[#allocation2 + $0xbc] ss:$0 sps:$4 sm:$0x11]  }
  0xd8   : > { %1894 = vrot.lane.b32.xlu1 %v1859_v41, %s4091_s6  ;;  %3724 = vmatprep.mubr.msk.bf16.mxu0 %vm2675_vm6, %v2621_v43  ;;  %v3968_v41 = vld [vmem:[#allocation2 + $0x98] ss:$0 sps:$4 sm:$0x33]   ;;  %v1688_v24 = vrot.slane %v3976_v35, 1 }
  0xd9   : > { %1892 = vrot.lane.b32.xlu0 %v1856_v21, %s4091_s6  ;;  %v871_v21 = vld [vmem:[#allocation2 + $0xb4] sm:$0xe]  ;;  %v1397_v30 = vrot.slane %v3968_v41, 2  ;;  %v4705_v41 = vld [vmem:[#allocation2 + $0xac] sm:$0xf] }
  0xda   : > { %v4645_v44 = vpop.permute.xlu1 %1241  ;;  %v2343_v58 = vpop.permute.xlu0 %2342  ;;  %v3479_v34 = vcombine.low %v871_v21, %v840_v13  ;;  %v3559_v21 = vcombine.low %v968_v11, %v4696_v5  ;;  %v809_v11 = vld [vmem:[#allocation2 + $0xa8] sm:$0xc] }
  0xdb   : > { %v2623_v62 = vsel %vm2615_vm5, %v2590_v57, %v2343_v58  ;;  %v1398_v50 = vsel %vm1359_vm3, %v1396_v29, %v1397_v30  ;;  %v3361_v57 = vcombine.low %v725_v39, %v4021_v54  ;;  %v3449_v58 = vcombine.low %v837_v40, %v838_v8 }
  0xdc   : > { %2006 = vrot.lane.b32.xlu1 %v3528_v31, %s4089_s29  ;;  %3725 = vmatmul.mubr.msk.bf16.gmra.mxu0 %vm2675_vm6, %v2623_v62  ;;  %v839_v31 = vld [vmem:[#allocation2 + $0xb4] sm:$0xf]  ;;  %v1687_v48 = vrot.slane %v3479_v34, 1  ;;  %v1685_v62 = vrot.slane %v3974_v47, 1  ;;  %v2386_v30 = vsel %vm2368_vm9, %v3362_v53, %v4645_v44 }
  0xdd   : > { %2004 = vrot.lane.b32.xlu0 %v3527_v4, %s4089_s29  ;;  %v3450_v43 = vcombine.low %v839_v31, %v840_v13  ;;  %v901_v4 = vld [vmem:[#allocation2 + $0xa8] sm:$0xc]  ;;  %v936_v13 = vld [vmem:[#allocation2 + $0xcc] sm:$0xf]  ;;  %v934_v31 = vld [vmem:[#allocation2 + $0xc0] sm:$0xf] }
  0xde   : > { %v4660_v0 = vpop.permute.xlu1 %1418  ;;  %v4667_v38 = vpop.permute.xlu0 %1416  ;;  %v1689_v63 = vsel %vm1182_vm4, %v1687_v48, %v1688_v24  ;;  %v1686_v55 = vsel %vm1182_vm4, %v1684_v61, %v1685_v62  ;;  %v3983_v44 = vld [vmem:[#allocation2 + $0xc8] ss:$0 sps:$4 sm:$0x11]   ;;  %v3987_v47 = vld [vmem:[#allocation2 + $0xb0] ss:$0 sps:$4 sm:$0x11]  }
  0xdf   : > { %v2429_v6 = vsel %vm2417_vm10, %v2386_v30, %v4660_v0  ;;  %v4733_v48 = vld [vmem:[#allocation2 + $0xb8] sm:$0xf]  ;;  %v779_v24 = vld [vmem:[#allocation2 + $0xb4] sm:$0xe]  ;;  %v1226_v61 = vrot.slane %v3987_v47, 1 }
  0xe0   : > { %2182 = vrot.lane.b32.xlu1 %v2147_v36, %s4092_s7  ;;  %v3509_v36 = vcombine.low %v901_v4, %v838_v8  ;;  %v1000_v62 = vld [vmem:[#allocation2 + $0xcc] sm:$0xc] }
  0xe1   : > { %2180 = vrot.lane.b32.xlu0 %v2144_v33, %s4092_s7  ;;  %v1864_v33 = vrot.slane %v3980_v59, 2  ;;  %v3591_v53 = vcombine.low %v1000_v62, %v4696_v5  ;;  %v4023_v62 = vld [vmem:[#allocation2 + $0x4c] sm:$0xf] }
  0xe2   : > { %v4671_v18 = vpop.permute.xlu1 %1530  ;;  %v4677_v22 = vpop.permute.xlu0 %1528  ;;  %v1860_v15 = vrot.slane %v3509_v36, 2  ;;  %v3985_v36 = vld [vmem:[#allocation2 + $0xc8] ss:$0 sps:$4 sm:$0x33]  }
  0xe3   : > { %v1865_v27 = vsel %vm1359_vm3, %v1863_v1, %v1864_v33  ;;  %v2462_v39 = vsel %vm2450_vm11, %v2429_v6, %v4671_v18  ;;  %v3529_v18 = vcombine.low %v934_v31, %v935_v56  ;;  %v2325_v14 = vrot.slane %v3985_v36, 2  ;;  %v844_v31 = vld [vmem:[#allocation2 + $0xd0] sm:$0xf] }
  0xe4   : > { %1255 = vrot.lane.b32.xlu1 %v1221_v12, %s4087_s27  ;;  %v2383_v12 = vsel %vm2368_vm9, %v3361_v57, %v4626_v2  ;;  %v2149_v57 = vrot.slane %v3983_v44, 1  ;;  %v843_v44 = vld [vmem:[#allocation2 + $0xcc] sm:$0xf] }
  0xe5   : > { %2356 = vrot.lane.b32.xlu0 %v2320_v19, %s4093_s8  ;;  %v966_v19 = vld [vmem:[#allocation2 + $0xc0] sm:$0xe]  ;;  %v2427_v7 = vsel %vm2417_vm10, %v2383_v12, %v4667_v38 }
  0xe6   : > { %v4680_v17 = vpop.permute.xlu1 %1706  ;;  %v1705_v32 = vpop.permute.xlu0 %1704  ;;  %v2460_v2 = vsel %vm2450_vm11, %v2427_v7, %v4677_v22  ;;  %v1862_v22 = vsel %vm1359_vm3, %v1860_v15, %v1861_v16  ;;  %v3557_v35 = vcombine.low %v966_v19, %v935_v56  ;;  %v3988_v15 = vld [vmem:[#allocation2 + $0xd4] ss:$0 sps:$4 sm:$0x33]  }
  0xe7   : > { %v2493_v38 = vsel %vm2483_vm12, %v2460_v2, %v1705_v32  ;;  %v3530_v32 = vcombine.low %v936_v13, %v4696_v5  ;;  %v2495_v0 = vsel %vm2483_vm12, %v2462_v39, %v4680_v17  ;;  %v2327_v5 = vrot.slane %v3591_v53, 2 }
  0xe8   : > { %1257 = vrot.lane.b32.xlu1 %v1224_v23, %s4087_s27  ;;  %v777_v23 = vld [vmem:[#allocation2 + $0xa8] sm:$0xe]  ;;  %v2148_v17 = vrot.slane %v3557_v35, 1  ;;  %v842_v35 = vld [vmem:[#allocation2 + $0xc4] sm:$0xf] }
  0xe9   : > { %2358 = vrot.lane.b32.xlu0 %v2323_v28, %s4093_s8  ;;  %v3984_v28 = vld [vmem:[#allocation2 + $0xd4] ss:$0 sps:$4 sm:$0x11]  }
  0xea   : > { %v4686_v37 = vpop.permute.xlu1 %1882  ;;  %v1881_v42 = vpop.permute.xlu0 %1880  ;;  %v2152_v46 = vrot.slane %v3984_v28, 1 }
  0xeb   : > { %v2526_v8 = vsel %vm2516_vm13, %v2493_v38, %v1881_v42  ;;  %v2528_v49 = vsel %vm2516_vm13, %v2495_v0, %v4686_v37 }
  0xec   : > { %1434 = vrot.lane.b32.xlu1 %v1401_v25, %s4086_s26  ;;  %v3401_v25 = vcombine.low %v777_v23, %v4705_v41  ;;  %v3994_v23 = vld [vmem:[#allocation2 + $0xbc] ss:$0 sps:$4 sm:$0x33]  }
  0xed   : > { %1432 = vrot.lane.b32.xlu0 %v1398_v50, %s4086_s26 }
  0xee   : > { %v4691_v51 = vpop.permute.xlu1 %1994  ;;  %v1993_v10 = vpop.permute.xlu0 %1992  ;;  %v1225_v59 = vrot.slane %v3401_v25, 1  ;;  %v875_v25 = vld [vmem:[#allocation2 + $0xcc] sm:$0xe] }
  0xef   : > { %v2559_v34 = vsel %vm2549_vm14, %v2526_v8, %v1993_v10  ;;  %v2561_v54 = vsel %vm2549_vm14, %v2528_v49, %v4691_v51  ;;  %v3403_v10 = vcombine.low %v779_v24, %v4733_v48  ;;  %v811_v51 = vld [vmem:[#allocation2 + $0xb4] sm:$0xc]  ;;  %v1406_v8 = vrot.slane %v3994_v23, 2  ;;  %v729_v24 = vld [vmem:[#allocation2 + $0x48] sm:$0xf] }
  0xf0   : > { %1546 = vrot.lane.b32.xlu1 %v3450_v43, %s4088_s28  ;;  %v2151_v43 = vrot.slane %v3559_v21, 1  ;;  %v1227_v19 = vsel %vm1182_vm4, %v1225_v59, %v1226_v61  ;;  %v2328_v21 = vrot.slane %v3988_v15, 2  ;;  %v841_v49 = vld [vmem:[#allocation2 + $0xc0] sm:$0xf]  ;;  %v3452_v59 = vcombine.low %v843_v44, %v844_v31 }
  0xf1   : > { %1544 = vrot.lane.b32.xlu0 %v3449_v58, %s4088_s28  ;;  %v3589_v58 = vcombine.low %v998_v26, %v935_v56  ;;  %v1228_v7 = vrot.slane %v3403_v10, 1  ;;  %v3435_v56 = vcombine.low %v811_v51, %v4733_v48  ;;  %v2921_v26 = vld [vmem:[%s5116_s3] sm:$0x3]  ;;  %v3363_v10 = vcombine.low %v729_v24, %v4023_v62  ;;  %v4002_v51 = vld [vmem:[#allocation2 + $0xc8] ss:$0 sps:$4 sm:$0x33]  }
  0xf2   : > { %v2171_v3 = vpop.permute.xlu1 %2170  ;;  %v2169_v9 = vpop.permute.xlu0 %2168  ;;  %v2153_v37 = vsel %vm1182_vm4, %v2151_v43, %v2152_v46  ;;  %v3483_v43 = vcombine.low %v875_v25, %v844_v31  ;;  %v4000_v46 = vld [vmem:[#allocation2 + $0xd4] ss:$0 sps:$4 sm:$0x11]   ;;  %3787 = vmatprep.subr.msk.bf16.mxu1 %vm2708_vm8, %v2921_v26  ;;  %v2978_v47 = vsel %vm2708_vm8, %v2921_v26, 0 }
  0xf3   : > { %v2592_v40 = vsel %vm2582_vm15, %v2559_v34, %v2169_v9  ;;  %v2594_v52 = vsel %vm2582_vm15, %v2561_v54, %v2171_v3  ;;  %v2150_v3 = vsel %vm1182_vm4, %v2148_v17, %v2149_v57  ;;  %v2324_v12 = vrot.slane %v3589_v58, 2  ;;  %3753 = vmatpush3.bf16.msra.mxu1 %v2978_v47  ;;  %v3998_v17 = vld [vmem:[#allocation2 + $0xc8] ss:$0 sps:$4 sm:$0x11]   ;;  %v905_v57 = vld [vmem:[#allocation2 + $0xc0] sm:$0xc] }
  0xf4   : > { %1722 = vrot.lane.b32.xlu1 %v1689_v63, %s4090_s30  ;;  %v3990_v63 = vld [vmem:[#allocation2 + $0xbc] ss:$0 sps:$4 sm:$0x11]   ;;  %v3433_v9 = vcombine.low %v809_v11, %v4705_v41  ;;  %v1405_v30 = vrot.slane %v3435_v56, 2  ;;  %v1693_v36 = vrot.slane %v3483_v43, 1 }
  0xf5   : > { %1720 = vrot.lane.b32.xlu0 %v1686_v55, %s4090_s30  ;;  %v1229_v55 = vrot.slane %v3990_v63, 1  ;;  %v2326_v13 = vsel %vm1359_vm3, %v2324_v12, %v2325_v14  ;;  %v3451_v63 = vcombine.low %v841_v49, %v842_v35  ;;  %v731_v11 = vld [vmem:[#allocation2 + $0x54] sm:$0xf]  ;;  %v1691_v12 = vrot.slane %v3998_v17, 1 }
  0xf6   : > { %v4712_v29 = vpop.permute.xlu1 %1243  ;;  %v2345_v50 = vpop.permute.xlu0 %2344  ;;  %v1402_v6 = vrot.slane %v3433_v9, 2  ;;  %v4024_v9 = vld [vmem:[#allocation2 + $0x58] sm:$0xf] }
  0xf7   : > { %v2625_v4 = vsel %vm2615_vm5, %v2592_v40, %v2345_v50  ;;  %v1230_v38 = vsel %vm1182_vm4, %v1228_v7, %v1229_v55  ;;  %v1407_v40 = vsel %vm1359_vm3, %v1405_v30, %v1406_v8  ;;  %v873_v50 = vld [vmem:[#allocation2 + $0xc0] sm:$0xe]  ;;  %v941_v7 = vld [vmem:[#allocation2 + $0xe8] sm:$0xf]  ;;  %v972_v55 = vld [vmem:[#allocation2 + $0xe4] sm:$0xe]  ;;  %v2389_v23 = vsel %vm2368_vm9, %v3363_v10, %v4712_v29 }
  0xf8   : > { %1898 = vrot.lane.b32.xlu1 %v1865_v27, %s4091_s6  ;;  %3728 = vmatprep.mubr.msk.bf16.mxu0 %vm2675_vm6, %v2625_v4  ;;  %v3992_v27 = vld [vmem:[#allocation2 + $0xb0] ss:$0 sps:$4 sm:$0x33]   ;;  %v907_v4 = vld [vmem:[#allocation2 + $0xcc] sm:$0xc]  ;;  %v3481_v54 = vcombine.low %v873_v50, %v842_v35 }
  0xf9   : > { %1896 = vrot.lane.b32.xlu0 %v1862_v22, %s4091_s6  ;;  %v1403_v34 = vrot.slane %v3992_v27, 2  ;;  %v3364_v27 = vcombine.low %v731_v11, %v4024_v9  ;;  %v939_v30 = vld [vmem:[#allocation2 + $0xdc] sm:$0xf]  ;;  %v940_v8 = vld [vmem:[#allocation2 + $0xe4] sm:$0xf] }
  0xfa   : > { %v4731_v42 = vpop.permute.xlu1 %1245  ;;  %v2347_v60 = vpop.permute.xlu0 %2346 }
  0xfb   : > { %v2627_v1 = vsel %vm2615_vm5, %v2594_v52, %v2347_v60  ;;  %v1694_v52 = vrot.slane %v4000_v46, 1  ;;  %v3515_v60 = vcombine.low %v907_v4, %v844_v31  ;;  %v3563_v31 = vcombine.low %v972_v55, %v941_v7  ;;  %v4008_v4 = vld [vmem:[#allocation2 + $0xe0] ss:$0 sps:$4 sm:$0x11]  }
  0xfc   : > { %2010 = vrot.lane.b32.xlu1 %v3530_v32, %s4089_s29  ;;  %3729 = vmatmul.mubr.msk.bf16.gmra.mxu0 %vm2675_vm6, %v2627_v1  ;;  %v2329_v32 = vsel %vm1359_vm3, %v2327_v5, %v2328_v21  ;;  %v3513_v1 = vcombine.low %v905_v57, %v842_v35  ;;  %v1867_v5 = vrot.slane %v4002_v51, 2  ;;  %v2392_v26 = vsel %vm2368_vm9, %v3364_v27, %v4731_v42  ;;  %v4014_v57 = vld [vmem:[#allocation2 + $0xec] ss:$0 sps:$4 sm:$0x33]  }
  0xfd   : > { %2008 = vrot.lane.b32.xlu0 %v3529_v18, %s4089_s29  ;;  %v1404_v18 = vsel %vm1359_vm3, %v1402_v6, %v1403_v34  ;;  %v1695_v53 = vsel %vm1182_vm4, %v1693_v36, %v1694_v52  ;;  %v1869_v15 = vrot.slane %v3515_v60, 2  ;;  %v970_v34 = vld [vmem:[#allocation2 + $0xd8] sm:$0xe]  ;;  %v2157_v24 = vrot.slane %v3563_v31, 1 }
  0xfe   : > { %v4746_v33 = vpop.permute.xlu1 %1422  ;;  %v4753_v16 = vpop.permute.xlu0 %1420  ;;  %v3561_v47 = vcombine.low %v970_v34, %v939_v30  ;;  %v2155_v62 = vrot.slane %v4008_v4, 1  ;;  %v2334_v11 = vrot.slane %v4014_v57, 2 }
  0xff   : > { %v2431_v21 = vsel %vm2417_vm10, %v2389_v23, %v4753_v16  ;;  %v1004_v16 = vld [vmem:[#allocation2 + $0xe4] sm:$0xc]  ;;  %v2433_v43 = vsel %vm2417_vm10, %v2392_v26, %v4746_v33 }
 0x100   : > { %2186 = vrot.lane.b32.xlu1 %v2153_v37, %s4092_s7  ;;  %v4004_v37 = vld [vmem:[#allocation2 + $0xd4] ss:$0 sps:$4 sm:$0x33]   ;;  %v3595_v17 = vcombine.low %v1004_v16, %v941_v7 }
 0x101   : > { %2184 = vrot.lane.b32.xlu0 %v2150_v3, %s4092_s7  ;;  %v1690_v3 = vrot.slane %v3481_v54, 1  ;;  %v1002_v54 = vld [vmem:[#allocation2 + $0xd8] sm:$0xc] }
 0x102   : > { %v4757_v2 = vpop.permute.xlu1 %1534  ;;  %v4763_v28 = vpop.permute.xlu0 %1532  ;;  %v3593_v10 = vcombine.low %v1002_v54, %v939_v30 }
 0x103   : > { %v2464_v25 = vsel %vm2450_vm11, %v2431_v21, %v4763_v28  ;;  %v3532_v28 = vcombine.low %v940_v8, %v941_v7  ;;  %v2466_v42 = vsel %vm2450_vm11, %v2433_v43, %v4757_v2  ;;  %v735_v8 = vld [vmem:[#allocation2 + $0x6c] sm:$0xf] }
 0x104   : > { %1259 = vrot.lane.b32.xlu1 %v1227_v19, %s4087_s27  ;;  %v1870_v19 = vrot.slane %v4004_v37, 2  ;;  %v2154_v37 = vrot.slane %v3561_v47, 1 }
 0x105   : > { %2360 = vrot.lane.b32.xlu0 %v2326_v13, %s4093_s8  ;;  %v1866_v13 = vrot.slane %v3513_v1, 2 }
 0x106   : > { %v4766_v22 = vpop.permute.xlu1 %1710  ;;  %v1709_v39 = vpop.permute.xlu0 %1708  ;;  %v1871_v6 = vsel %vm1359_vm3, %v1869_v15, %v1870_v19 }
 0x107   : > { %v2497_v35 = vsel %vm2483_vm12, %v2464_v25, %v1709_v39  ;;  %v1868_v50 = vsel %vm1359_vm3, %v1866_v13, %v1867_v5  ;;  %v938_v39 = vld [vmem:[#allocation2 + $0xd8] sm:$0xf]  ;;  %v2499_v33 = vsel %vm2483_vm12, %v2466_v42, %v4766_v22  ;;  %v4012_v22 = vld [vmem:[#allocation2 + $0xe0] ss:$0 sps:$4 sm:$0x33]  }
 0x108   : > { %1261 = vrot.lane.b32.xlu1 %v1230_v38, %s4087_s27  ;;  %v1692_v38 = vsel %vm1182_vm4, %v1690_v3, %v1691_v12  ;;  %v3531_v2 = vcombine.low %v938_v39, %v939_v30  ;;  %v733_v13 = vld [vmem:[#allocation2 + $0x60] sm:$0xf] }
 0x109   : > { %2362 = vrot.lane.b32.xlu0 %v2329_v32, %s4093_s8  ;;  %v4010_v32 = vld [vmem:[#allocation2 + $0xec] ss:$0 sps:$4 sm:$0x11]  }
 0x10a   : > { %v4777_v0 = vpop.permute.xlu1 %1886  ;;  %v1885_v58 = vpop.permute.xlu0 %1884 }
 0x10b   : > { %v2532_v52 = vsel %vm2516_vm13, %v2499_v33, %v4777_v0  ;;  %v2333_v0 = vrot.slane %v3595_v17, 2 }
 0x10c   : > { %1438 = vrot.lane.b32.xlu1 %v1407_v40, %s4086_s26  ;;  %v2530_v40 = vsel %vm2516_vm13, %v2497_v35, %v1885_v58 }
 0x10d   : > { %1436 = vrot.lane.b32.xlu0 %v1404_v18, %s4086_s26  ;;  %v2335_v19 = vsel %vm1359_vm3, %v2333_v0, %v2334_v11 }
 0x10e   : > { %v4782_v61 = vpop.permute.xlu1 %1998  ;;  %v1997_v14 = vpop.permute.xlu0 %1996 }
 0x10f   : > { %v2563_v46 = vsel %vm2549_vm14, %v2530_v40, %v1997_v14  ;;  %v2565_v60 = vsel %vm2549_vm14, %v2532_v52, %v4782_v61  ;;  %v2156_v61 = vsel %vm1182_vm4, %v2154_v37, %v2155_v62  ;;  %v2330_v14 = vrot.slane %v3593_v10, 2  ;;  %v737_v37 = vld [vmem:[#allocation2 + $0x78] sm:$0xf] }
 0x110   : > { %1550 = vrot.lane.b32.xlu1 %v3452_v59, %s4088_s28  ;;  %v2158_v59 = vrot.slane %v4010_v32, 1 }
 0x111   : > { %1548 = vrot.lane.b32.xlu0 %v3451_v63, %s4088_s28 }
 0x112   : > { %v2175_v56 = vpop.permute.xlu1 %2174  ;;  %v2173_v29 = vpop.permute.xlu0 %2172  ;;  %v2159_v51 = vsel %vm1182_vm4, %v2157_v24, %v2158_v59 }
 0x113   : > { %v2596_v49 = vsel %vm2582_vm15, %v2563_v46, %v2173_v29  ;;  %v2598_v63 = vsel %vm2582_vm15, %v2565_v60, %v2175_v56 }
 0x114   : > { %1726 = vrot.lane.b32.xlu1 %v1695_v53, %s4090_s30  ;;  %v2331_v53 = vrot.slane %v4012_v22, 2  ;;  %v4027_v22 = vld [vmem:[#allocation2 + $0x7c] sm:$0xf] }
 0x115   : > { %1724 = vrot.lane.b32.xlu0 %v1692_v38, %s4090_s30  ;;  %v4025_v38 = vld [vmem:[#allocation2 + $0x64] sm:$0xf] }
 0x116   : > { %v4798_v44 = vpop.permute.xlu1 %1247  ;;  %v2349_v18 = vpop.permute.xlu0 %2348  ;;  %v2332_v55 = vsel %vm1359_vm3, %v2330_v14, %v2331_v53  ;;  %v3365_v30 = vcombine.low %v733_v13, %v4025_v38 }
 0x117   : > { %v2629_v58 = vsel %vm2615_vm5, %v2596_v49, %v2349_v18 }
 0x118   : > { %1902 = vrot.lane.b32.xlu1 %v1871_v6, %s4091_s6  ;;  %3732 = vmatprep.mubr.msk.bf16.mxu0 %vm2675_vm6, %v2629_v58  ;;  %v2395_v29 = vsel %vm2368_vm9, %v3365_v30, %v4798_v44  ;;  %v4026_v6 = vld [vmem:[#allocation2 + $0x70] sm:$0xf] }
 0x119   : > { %1900 = vrot.lane.b32.xlu0 %v1868_v50, %s4091_s6  ;;  %v3366_v34 = vcombine.low %v735_v8, %v4026_v6 }
 0x11a   : > { %v1250_v36 = vpop.permute.xlu1 %1249  ;;  %v2351_v1 = vpop.permute.xlu0 %2350 }
 0x11b   : > { %v2631_v3 = vsel %vm2615_vm5, %v2598_v63, %v2351_v1  ;;  %v2398_v50 = vsel %vm2368_vm9, %v3366_v34, %v1250_v36  ;;  %v3367_v63 = vcombine.low %v737_v37, %v4027_v22  ;;  %v739_v1 = vld [vmem:[#allocation2 + $0x84] sm:$0xf] }
 0x11c   : > { %2014 = vrot.lane.b32.xlu1 %v3532_v28, %s4089_s29  ;;  %3733 = vmatmul.mubr.msk.bf16.gmra.mxu0 %vm2675_vm6, %v2631_v3  ;;  %v4028_v3 = vld [vmem:[#allocation2 + $0x88] sm:$0xf] }
 0x11d   : > { %2012 = vrot.lane.b32.xlu0 %v3531_v2, %s4089_s29  ;;  %s4969_s29 = scalar_lea.vmem %s5118_s5, %s3636_s22 }
 0x11e   : > { %v1427_v12 = vpop.permute.xlu1 %1426  ;;  %v1425_v15 = vpop.permute.xlu0 %1424 }
 0x11f   : > { %v2435_v32 = vsel %vm2417_vm10, %v2395_v29, %v1425_v15  ;;  %v2437_v43 = vsel %vm2417_vm10, %v2398_v50, %v1427_v12  ;;  %v3368_v12 = vcombine.low %v739_v1, %v4028_v3  ;;  %v741_v50 = vld [vmem:[#allocation2 + $0x90] sm:$0xf]  ;;  %v4894_v3 = vld [vmem:[%s5115_s2] ss:$0 sm:$0xff] }
 0x120   : > { %2190 = vrot.lane.b32.xlu1 %v2159_v51, %s4092_s7 }
 0x121   : > { %2188 = vrot.lane.b32.xlu0 %v2156_v61, %s4092_s7 }
 0x122   : > { %v1539_v7 = vpop.permute.xlu1 %1538  ;;  %v1537_v56 = vpop.permute.xlu0 %1536 }
 0x123   : > { %v2468_v35 = vsel %vm2450_vm11, %v2435_v32, %v1537_v56  ;;  %v2470_v44 = vsel %vm2450_vm11, %v2437_v43, %v1539_v7 }
 0x124   : > { %2366 = vrot.lane.b32.xlu1 %v2335_v19, %s4093_s8 }
 0x125   : > { %2364 = vrot.lane.b32.xlu0 %v2332_v55, %s4093_s8 }
 0x126   : > { %v1715_v23 = vpop.permute.xlu1 %1714  ;;  %v1713_v9 = vpop.permute.xlu0 %1712 }
 0x127   : > { %v2501_v26 = vsel %vm2483_vm12, %v2468_v35, %v1713_v9  ;;  %v2503_v4 = vsel %vm2483_vm12, %v2470_v44, %v1715_v23  ;;  %v743_v44 = vld [vmem:[#allocation2 + $0x9c] sm:$0xf] }
 0x12a   : > { %v1891_v27 = vpop.permute.xlu1 %1890 }
 0x12b   : > { %v1889_v5 = vpop.permute.xlu0 %1888  ;;  %v2536_v49 = vsel %vm2516_vm13, %v2503_v4, %v1891_v27 }
 0x12c   : > { %v2534_v28 = vsel %vm2516_vm13, %v2501_v26, %v1889_v5 }
 0x12e   : > { %v2003_v21 = vpop.permute.xlu1 %2002 }
 0x12f   : > { %v2001_v31 = vpop.permute.xlu0 %2000  ;;  %v2569_v18 = vsel %vm2549_vm14, %v2536_v49, %v2003_v21 }
 0x130   : > { %v2567_v46 = vsel %vm2549_vm14, %v2534_v28, %v2001_v31 }
 0x132   : > { %v2179_v25 = vpop.permute.xlu1 %2178 }
 0x133   : > { %v2177_v16 = vpop.permute.xlu0 %2176  ;;  %v2602_v59 = vsel %vm2582_vm15, %v2569_v18, %v2179_v25 }
 0x134   : > { %v2600_v39 = vsel %vm2582_vm15, %v2567_v46, %v2177_v16  ;;  %v3369_v46 = vcombine.low %v741_v50, %v4619_v20 }
 0x136   : > { %v1252_v40 = vpop.permute.xlu1 %1251 }
 0x137   : > { %v2353_v47 = vpop.permute.xlu0 %2352  ;;  %v2401_v11 = vsel %vm2368_vm9, %v3367_v63, %v1252_v40 }
 0x138   : > { %v2633_v24 = vsel %vm2615_vm5, %v2600_v39, %v2353_v47 }
 0x139   : > { %3736 = vmatprep.mubr.msk.bf16.mxu0 %vm2675_vm6, %v2633_v24  ;;  %v3370_v24 = vcombine.low %v743_v44, %v4647_v45 }
 0x13a   : > { %v1254_v42 = vpop.permute.xlu1 %1253 }
 0x13b   : > { %v2355_v54 = vpop.permute.xlu0 %2354  ;;  %v2404_v7 = vsel %vm2368_vm9, %v3368_v12, %v1254_v42 }
 0x13c   : > { %v2635_v17 = vsel %vm2615_vm5, %v2602_v59, %v2355_v54 }
 0x13d   : > { %3737 = vmatmul.mubr.msk.bf16.gmra.mxu0 %vm2675_vm6, %v2635_v17 }
 0x13e   : > { %v1431_v57 = vpop.permute.xlu1 %1430 }
 0x13f   : > { %v1429_v33 = vpop.permute.xlu0 %1428  ;;  %v2441_v56 = vsel %vm2417_vm10, %v2404_v7, %v1431_v57 }
 0x140   : > { %v2439_v61 = vsel %vm2417_vm10, %v2401_v11, %v1429_v33 }
 0x142   : > { %v1543_v58 = vpop.permute.xlu1 %1542 }
 0x143   : > { %v1541_v36 = vpop.permute.xlu0 %1540  ;;  %v2474_v9 = vsel %vm2450_vm11, %v2441_v56, %v1543_v58 }
 0x144   : > { %v2472_v14 = vsel %vm2450_vm11, %v2439_v61, %v1541_v36 }
 0x146   : > { %v1719_v52 = vpop.permute.xlu1 %1718 }
 0x147   : > { %v1717_v2 = vpop.permute.xlu0 %1716  ;;  %v2507_v5 = vsel %vm2483_vm12, %v2474_v9, %v1719_v52 }
 0x148   : > { %v2505_v15 = vsel %vm2483_vm12, %v2472_v14, %v1717_v2 }
 0x14a   : > { %v1895_v60 = vpop.permute.xlu1 %1894 }
 0x14b   : > { %v1893_v62 = vpop.permute.xlu0 %1892  ;;  %v2540_v30 = vsel %vm2516_vm13, %v2507_v5, %v1895_v60 }
 0x14c   : > { %v2538_v55 = vsel %vm2516_vm13, %v2505_v15, %v1893_v62 }
 0x14e   : > { %v2007_v10 = vpop.permute.xlu1 %2006 }
 0x14f   : > { %v2005_v51 = vpop.permute.xlu0 %2004  ;;  %v2573_v8 = vsel %vm2549_vm14, %v2540_v30, %v2007_v10  ;;  %v747_v30 = vld [vmem:[#allocation2 + $0xb4] sm:$0xf] }
 0x150   : > { %v2571_v23 = vsel %vm2549_vm14, %v2538_v55, %v2005_v51 }
 0x152   : > { %v2183_v0 = vpop.permute.xlu1 %2182 }
 0x153   : > { %v2181_v53 = vpop.permute.xlu0 %2180  ;;  %v2606_v31 = vsel %vm2582_vm15, %v2573_v8, %v2183_v0 }
 0x154   : > { %v2604_v27 = vsel %vm2582_vm15, %v2571_v23, %v2181_v53 }
 0x156   : > { %v1256_v19 = vpop.permute.xlu1 %1255 }
 0x157   : > { %v2357_v13 = vpop.permute.xlu0 %2356  ;;  %v2407_v4 = vsel %vm2368_vm9, %v3369_v46, %v1256_v19 }
 0x158   : > { %v2637_v21 = vsel %vm2615_vm5, %v2604_v27, %v2357_v13 }
 0x159   : > { %3740 = vmatprep.mubr.msk.bf16.mxu0 %vm2675_vm6, %v2637_v21 }
 0x15a   : > { %v1258_v38 = vpop.permute.xlu1 %1257 }
 0x15b   : > { %v2359_v25 = vpop.permute.xlu0 %2358  ;;  %v2410_v17 = vsel %vm2368_vm9, %v3370_v24, %v1258_v38 }
 0x15c   : > { %v2639_v29 = vsel %vm2615_vm5, %v2606_v31, %v2359_v25  ;;  %v745_v31 = vld [vmem:[#allocation2 + $0xa8] sm:$0xf] }
 0x15d   : > { %3741 = vmatmul.mubr.msk.bf16.gmra.mxu0 %vm2675_vm6, %v2639_v29  ;;  %v3372_v29 = vcombine.low %v747_v30, %v4733_v48 }
 0x15e   : > { %v1435_v6 = vpop.permute.xlu1 %1434 }
 0x15f   : > { %v1433_v34 = vpop.permute.xlu0 %1432  ;;  %v2445_v20 = vsel %vm2417_vm10, %v2410_v17, %v1435_v6 }
 0x160   : > { %v2443_v42 = vsel %vm2417_vm10, %v2407_v4, %v1433_v34  ;;  %v3371_v34 = vcombine.low %v745_v31, %v4705_v41 }
 0x162   : > { %v1547_v32 = vpop.permute.xlu1 %1546 }
 0x163   : > { %v1545_v35 = vpop.permute.xlu0 %1544  ;;  %v2478_v58 = vsel %vm2450_vm11, %v2445_v20, %v1547_v32 }
 0x164   : > { %v2476_v49 = vsel %vm2450_vm11, %v2443_v42, %v1545_v35 }
 0x166   : > { %v1723_v16 = vpop.permute.xlu1 %1722 }
 0x167   : > { %v1721_v26 = vpop.permute.xlu0 %1720  ;;  %v2511_v52 = vsel %vm2483_vm12, %v2478_v58, %v1723_v16 }
 0x168   : > { %v2509_v59 = vsel %vm2483_vm12, %v2476_v49, %v1721_v26 }
 0x16a   : > { %v1899_v40 = vpop.permute.xlu1 %1898 }
 0x16b   : > { %v1897_v28 = vpop.permute.xlu0 %1896  ;;  %v2544_v37 = vsel %vm2516_vm13, %v2511_v52, %v1899_v40 }
 0x16c   : > { %v2542_v57 = vsel %vm2516_vm13, %v2509_v59, %v1897_v28 }
 0x16e   : > { %v2011_v43 = vpop.permute.xlu1 %2010 }
 0x16f   : > { %v2009_v39 = vpop.permute.xlu0 %2008  ;;  %v2577_v62 = vsel %vm2549_vm14, %v2544_v37, %v2011_v43 }
 0x170   : > { %v2575_v33 = vsel %vm2549_vm14, %v2542_v57, %v2009_v39 }
 0x172   : > { %v2187_v47 = vpop.permute.xlu1 %2186 }
 0x173   : > { %v2185_v18 = vpop.permute.xlu0 %2184  ;;  %v2610_v10 = vsel %vm2582_vm15, %v2577_v62, %v2187_v47 }
 0x174   : > { %v2608_v45 = vsel %vm2582_vm15, %v2575_v33, %v2185_v18 }
 0x176   : > { %v1260_v54 = vpop.permute.xlu1 %1259 }
 0x177   : > { %v2361_v36 = vpop.permute.xlu0 %2360  ;;  %v2413_v26 = vsel %vm2368_vm9, %v3371_v34, %v1260_v54 }
 0x178   : > { %v2641_v2 = vsel %vm2615_vm5, %v2608_v45, %v2361_v36 }
 0x179   : > { %3744 = vmatprep.mubr.msk.bf16.mxu0 %vm2675_vm6, %v2641_v2 }
 0x17a   : > { %v1262_v60 = vpop.permute.xlu1 %1261 }
 0x17b   : > { %v2363_v22 = vpop.permute.xlu0 %2362  ;;  %v2416_v35 = vsel %vm2368_vm9, %v3372_v29, %v1262_v60 }
 0x17c   : > { %v2643_v63 = vsel %vm2615_vm5, %v2610_v10, %v2363_v22  ;;  %v3722_v51 = vpop.f32.mrf.mxu0 }
 0x17d   : > { %3745 = vmatmul.mubr.msk.bf16.gmra.mxu0 %vm2675_vm6, %v2643_v63  ;;  %v2755_v15 = vadd.f32 %v3722_v51, %v4894_v3 }
 0x17e   : > { %v1439_v1 = vpop.permute.xlu1 %1438  ;;  %v2746_v0 = vpop.f32.mrf.mxu0 }
 0x17f   : > { %v1437_v11 = vpop.permute.xlu0 %1436  ;;  %v2747_v14 = vadd.f32 %v4894_v3, %v2746_v0  ;;  %v2875_v13 = vmax.f32 %v2755_v15, 0.0  ;;  %v2449_v40 = vsel %vm2417_vm10, %v2416_v35, %v1439_v1 }
 0x180   : > { %v3723_v61 = vpop.f32.mrf.mxu0  ;;  %v2447_v50 = vsel %vm2417_vm10, %v2413_v26, %v1437_v11 }
 0x181   : > { %v2758_v53 = vadd.f32 %v3723_v61, %v4894_v3  ;;  %v2873_v9 = vmax.f32 %v2747_v14, 0.0 }
 0x182   : > { %v1551_v12 = vpop.permute.xlu1 %1550  ;;  %v2749_v19 = vpop.f32.mrf.mxu0 }
 0x183   : > { %v1549_v7 = vpop.permute.xlu0 %1548  ;;  %v2750_v55 = vadd.f32 %v4894_v3, %v2749_v19  ;;  %v2876_v23 = vmax.f32 %v2758_v53, 0.0  ;;  %v2482_v28 = vsel %vm2450_vm11, %v2449_v40, %v1551_v12 }
 0x184   : > { %v2480_v43 = vsel %vm2450_vm11, %v2447_v50, %v1549_v7 }
 0x185   : > { %v2874_v27 = vmax.f32 %v2750_v55, 0.0  ;;  %v2906_v8 = vpack.c.bf16 %v2876_v23, %v2875_v13 }
 0x186   : > { %v1727_v56 = vpop.permute.xlu1 %1726 }
 0x187   : > { %v1725_v5 = vpop.permute.xlu0 %1724  ;;  %v2905_v21 = vpack.c.bf16 %v2874_v27, %v2873_v9  ;;  %v2515_v46 = vsel %vm2483_vm12, %v2482_v28, %v1727_v56 }
 0x188   : > { %v2513_v44 = vsel %vm2483_vm12, %v2480_v43, %v1725_v5 }
 0x189   : > { %3754 = vmatprep.mubr.msk.bf16.mxu1 %vm2368_vm9, %v2905_v21 }
 0x18a   : > { %v1903_v38 = vpop.permute.xlu1 %1902  ;;  %3755 = vmatmul.mubr.msk.bf16.vlgmr.msra.gmra.mxu1 %vm2368_vm9, %v2906_v8 }
 0x18b   : > { %v1901_v25 = vpop.permute.xlu0 %1900  ;;  %v2548_v41 = vsel %vm2516_vm13, %v2515_v46, %v1903_v38 }
 0x18c   : > { %v2546_v47 = vsel %vm2516_vm13, %v2513_v44, %v1901_v25 }
 0x18e   : > { %v2015_v6 = vpop.permute.xlu1 %2014 }
 0x18f   : > { %v2013_v32 = vpop.permute.xlu0 %2012  ;;  %v2581_v4 = vsel %vm2549_vm14, %v2548_v41, %v2015_v6 }
 0x190   : > { %v2579_v24 = vsel %vm2549_vm14, %v2546_v47, %v2013_v32 }
 0x192   : > { %v2191_v16 = vpop.permute.xlu1 %2190 }
 0x193   : > { %v2189_v48 = vpop.permute.xlu0 %2188  ;;  %v2614_v42 = vsel %vm2582_vm15, %v2581_v4, %v2191_v16 }
 0x194   : > { %v2612_v49 = vsel %vm2582_vm15, %v2579_v24, %v2189_v48 }
 0x196   : > { %v2367_v39 = vpop.permute.xlu1 %2366 }
 0x197   : > { %v2365_v18 = vpop.permute.xlu0 %2364  ;;  %v2647_v59 = vsel %vm2615_vm5, %v2614_v42, %v2367_v39 }
 0x198   : > { %v2645_v54 = vsel %vm2615_vm5, %v2612_v49, %v2365_v18 }
 0x199   : > { %3748 = vmatprep.mubr.msk.bf16.mxu0 %vm2675_vm6, %v2645_v54 }
 0x19a   : > { %3749 = vmatmul.mubr.msk.bf16.gmra.mxu0 %vm2675_vm6, %v2647_v59 }
 0x19c   : > { %v3726_v17 = vpop.f32.mrf.mxu0 }
 0x19d   : > { %v2771_v45 = vadd.f32 %v3726_v17, %v4894_v3 }
 0x19e   : > { %v2762_v57 = vpop.f32.mrf.mxu0 }
 0x19f   : > { %v2763_v33 = vadd.f32 %v4894_v3, %v2762_v57  ;;  %v2879_v62 = vmax.f32 %v2771_v45, 0.0 }
 0x1a0   : > { %v3727_v20 = vpop.f32.mrf.mxu0 }
 0x1a1   : > { %v2774_v58 = vadd.f32 %v3727_v20, %v4894_v3  ;;  %v2877_v60 = vmax.f32 %v2763_v33, 0.0 }
 0x1a2   : > { %v2765_v36 = vpop.f32.mrf.mxu0 }
 0x1a3   : > { %v2766_v52 = vadd.f32 %v4894_v3, %v2765_v36  ;;  %v2880_v2 = vmax.f32 %v2774_v58, 0.0 }
 0x1a5   : > { %v2878_v37 = vmax.f32 %v2766_v52, 0.0  ;;  %v2908_v22 = vpack.c.bf16 %v2880_v2, %v2879_v62 }
 0x1a7   : > { %v2907_v10 = vpack.c.bf16 %v2878_v37, %v2877_v60 }
 0x1a9   : > { %3758 = vmatprep.mubr.msk.bf16.mxu1 %vm2368_vm9, %v2907_v10 }
 0x1aa   : > { %3759 = vmatmul.mubr.msk.bf16.gmra.mxu1 %vm2368_vm9, %v2908_v22 }
 0x1bc   : > { %v3730_v63 = vpop.f32.mrf.mxu0 }
 0x1bd   : > { %v2787_v12 = vadd.f32 %v3730_v63, %v4894_v3 }
 0x1be   : > { %v2778_v1 = vpop.f32.mrf.mxu0 }
 0x1bf   : > { %v2779_v0 = vadd.f32 %v4894_v3, %v2778_v1  ;;  %v2883_v7 = vmax.f32 %v2787_v12, 0.0 }
 0x1c0   : > { %v3731_v51 = vpop.f32.mrf.mxu0 }
 0x1c1   : > { %v2790_v11 = vadd.f32 %v3731_v51, %v4894_v3  ;;  %v2881_v15 = vmax.f32 %v2779_v0, 0.0 }
 0x1c2   : > { %v2781_v61 = vpop.f32.mrf.mxu0 }
 0x1c3   : > { %v2782_v14 = vadd.f32 %v4894_v3, %v2781_v61  ;;  %v2884_v53 = vmax.f32 %v2790_v11, 0.0 }
 0x1c5   : > { %v2882_v19 = vmax.f32 %v2782_v14, 0.0  ;;  %v2910_v56 = vpack.c.bf16 %v2884_v53, %v2883_v7  ;;  %v4959_v14 = vld [vmem:[%s5117_s4] ss:$0 sm:$0xff]  ;;  %v4029_v7 = vld [vmem:[%s4186_s25 + $0x10] sm:$0xff] }
 0x1c7   : > { %v2909_v55 = vpack.c.bf16 %v2882_v19, %v2881_v15 }
 0x1c9   : > { %3762 = vmatprep.mubr.msk.bf16.mxu1 %vm2368_vm9, %v2909_v55 }
 0x1ca   : > { %3763 = vmatmul.mubr.msk.bf16.gmra.mxu1 %vm2368_vm9, %v2910_v56 }
 0x1dc   : > { %v3734_v23 = vpop.f32.mrf.mxu0 }
 0x1dd   : > { %v2803_v21 = vadd.f32 %v3734_v23, %v4894_v3 }
 0x1de   : > { %v2794_v9 = vpop.f32.mrf.mxu0 }
 0x1df   : > { %v2795_v13 = vadd.f32 %v4894_v3, %v2794_v9  ;;  %v2887_v29 = vmax.f32 %v2803_v21, 0.0  ;;  %v4030_v9 = vld [vmem:[%s4186_s25] sm:$0xff]  ;;  %v4031_v21 = vld [vmem:[%s4186_s25 + $0x18] sm:$0xff] }
 0x1e0   : > { %v3735_v27 = vpop.f32.mrf.mxu0 }
 0x1e1   : > { %v2806_v5 = vadd.f32 %v3735_v27, %v4894_v3  ;;  %v2885_v31 = vmax.f32 %v2795_v13, 0.0 }
 0x1e2   : > { %v2797_v38 = vpop.f32.mrf.mxu0 }
 0x1e3   : > { %v2798_v30 = vadd.f32 %v4894_v3, %v2797_v38  ;;  %v2888_v8 = vmax.f32 %v2806_v5, 0.0 }
 0x1e5   : > { %v2886_v25 = vmax.f32 %v2798_v30, 0.0  ;;  %v2912_v34 = vpack.c.bf16 %v2888_v8, %v2887_v29  ;;  %v4032_v8 = vld [vmem:[%s4186_s25 + $0x8] sm:$0xff] }
 0x1e7   : > { %v2911_v6 = vpack.c.bf16 %v2886_v25, %v2885_v31 }
 0x1e9   : > { %3766 = vmatprep.mubr.msk.bf16.mxu1 %vm2368_vm9, %v2911_v6 }
 0x1ea   : > { %3767 = vmatmul.mubr.msk.bf16.gmra.mxu1 %vm2368_vm9, %v2912_v34 }
 0x1fd   : > { %v3738_v32 = vpop.f32.mrf.mxu0 }
 0x1fe   : > { %v2819_v50 = vadd.f32 %v3738_v32, %v4894_v3 }
 0x1ff   : > { %v2810_v35 = vpop.f32.mrf.mxu0 }
 0x200   : > { %v2811_v26 = vadd.f32 %v4894_v3, %v2810_v35  ;;  %v2891_v41 = vmax.f32 %v2819_v50, 0.0 }
 0x201   : > { %v3739_v16 = vpop.f32.mrf.mxu0 }
 0x202   : > { %v2822_v40 = vadd.f32 %v3739_v16, %v4894_v3  ;;  %v2889_v48 = vmax.f32 %v2811_v26, 0.0 }
 0x203   : > { %v2813_v28 = vpop.f32.mrf.mxu0 }
 0x204   : > { %v2814_v43 = vadd.f32 %v4894_v3, %v2813_v28  ;;  %v2892_v46 = vmax.f32 %v2822_v40, 0.0 }
 0x206   : > { %v2890_v44 = vmax.f32 %v2814_v43, 0.0  ;;  %v2914_v47 = vpack.c.bf16 %v2892_v46, %v2891_v41 }
 0x208   : > { %v2913_v39 = vpack.c.bf16 %v2890_v44, %v2889_v48 }
 0x20a   : > { %3770 = vmatprep.mubr.msk.bf16.mxu1 %vm2368_vm9, %v2913_v39  ;;  %v4033_v39 = vld [vmem:[%s4186_s25 + $0x30] sm:$0xff] }
 0x20b   : > { %3771 = vmatmul.mubr.msk.bf16.gmra.mxu1 %vm2368_vm9, %v2914_v47 }
 0x21d   : > { %v3742_v4 = vpop.f32.mrf.mxu0 }
 0x21e   : > { %v2835_v59 = vadd.f32 %v3742_v4, %v4894_v3 }
 0x21f   : > { %v2826_v24 = vpop.f32.mrf.mxu0 }
 0x220   : > { %v2827_v49 = vadd.f32 %v4894_v3, %v2826_v24  ;;  %v2895_v58 = vmax.f32 %v2835_v59, 0.0 }
 0x221   : > { %v3743_v42 = vpop.f32.mrf.mxu0 }
 0x222   : > { %v2838_v18 = vadd.f32 %v3743_v42, %v4894_v3  ;;  %v2893_v20 = vmax.f32 %v2827_v49, 0.0  ;;  %v4034_v42 = vld [vmem:[%s4186_s25 + $0x20] sm:$0xff] }
 0x223   : > { %v2829_v54 = vpop.f32.mrf.mxu0 }
 0x224   : > { %v2830_v17 = vadd.f32 %v4894_v3, %v2829_v54  ;;  %v2896_v57 = vmax.f32 %v2838_v18, 0.0  ;;  %v4035_v54 = vld [vmem:[%s4186_s25 + $0x38] sm:$0xff] }
 0x226   : > { %v2894_v33 = vmax.f32 %v2830_v17, 0.0  ;;  %v2916_v36 = vpack.c.bf16 %v2896_v57, %v2895_v58 }
 0x228   : > { %v2915_v45 = vpack.c.bf16 %v2894_v33, %v2893_v20  ;;  %v4036_v20 = vld [vmem:[%s4186_s25 + $0x28] sm:$0xff] }
 0x22a   : > { %3774 = vmatprep.mubr.msk.bf16.mxu1 %vm2368_vm9, %v2915_v45 }
 0x22b   : > { %3775 = vmatmul.mubr.msk.bf16.gmra.mxu1 %vm2368_vm9, %v2916_v36 }
 0x23d   : > { %v3746_v52 = vpop.f32.mrf.mxu0 }
 0x23e   : > { %v2851_v10 = vadd.f32 %v3746_v52, %v4894_v3  ;;  %v4037_v52 = vld [vmem:[%s4186_s25 + $0x50] sm:$0xff] }
 0x23f   : > { %v2842_v2 = vpop.f32.mrf.mxu0 }
 0x240   : > { %v2843_v37 = vadd.f32 %v4894_v3, %v2842_v2  ;;  %v2899_v11 = vmax.f32 %v2851_v10, 0.0 }
 0x241   : > { %v3747_v60 = vpop.f32.mrf.mxu0 }
 0x242   : > { %v2854_v62 = vadd.f32 %v3747_v60, %v4894_v3  ;;  %v2897_v51 = vmax.f32 %v2843_v37, 0.0 }
 0x243   : > { %v2845_v22 = vpop.f32.mrf.mxu0 }
 0x244   : > { %v2846_v63 = vadd.f32 %v4894_v3, %v2845_v22  ;;  %v2900_v1 = vmax.f32 %v2854_v62, 0.0  ;;  %v4038_v62 = vld [vmem:[%s4186_s25 + $0x40] sm:$0xff] }
 0x246   : > { %v2898_v0 = vmax.f32 %v2846_v63, 0.0  ;;  %v2918_v61 = vpack.c.bf16 %v2900_v1, %v2899_v11  ;;  %v4039_v1 = vld [vmem:[%s4186_s25 + $0x58] sm:$0xff]  ;;  %v4040_v11 = vld [vmem:[%s4186_s25 + $0x48] sm:$0xff] }
 0x248   : > { %v2917_v12 = vpack.c.bf16 %v2898_v0, %v2897_v51 }
 0x24a   : > { %3778 = vmatprep.mubr.msk.bf16.mxu1 %vm2368_vm9, %v2917_v12  ;;  %v3756_v53 = vpop.f32.mrf.mxu1 }
 0x24b   : > { %3779 = vmatmul.mubr.msk.bf16.gmra.mxu1 %vm2368_vm9, %v2918_v61  ;;  %v3023_v15 = vadd.f32 %v3756_v53, %v4959_v14 }
 0x24c   : > { %v3014_v19 = vpop.f32.mrf.mxu1 }
 0x24d   : > { %v3143_v55 = vadd.f32 %v4029_v7, %v3023_v15  ;;  %v3015_v56 = vadd.f32 %v4959_v14, %v3014_v19  ;;  %v4041_v19 = vld [vmem:[%s4186_s25 + $0x70] sm:$0xff] }
 0x24e   : > { %v3757_v23 = vpop.f32.mrf.mxu1 }
 0x24f   : > { %3175 = vst.msk [vmem:[%s4969_s29 + $0x10] sm:$0xff] %vm2368_vm9, %v3143_v55  ;;  %v3141_v27 = vadd.f32 %v4030_v9, %v3015_v56  ;;  %v3026_v13 = vadd.f32 %v3757_v23, %v4959_v14  ;;  %v4042_v23 = vld [vmem:[%s4186_s25 + $0x60] sm:$0xff] }
 0x250   : > { %v3017_v5 = vpop.f32.mrf.mxu1 }
 0x251   : > { %3173 = vst.msk [vmem:[%s4969_s29] sm:$0xff] %vm2368_vm9, %v3141_v27  ;;  %v3144_v38 = vadd.f32 %v4031_v21, %v3026_v13  ;;  %v3018_v30 = vadd.f32 %v4959_v14, %v3017_v5  ;;  %v4043_v5 = vld [vmem:[%s4186_s25 + $0x78] sm:$0xff] }
 0x253   : > { %3176 = vst.msk [vmem:[%s4969_s29 + $0x18] sm:$0xff] %vm2368_vm9, %v3144_v38  ;;  %v3142_v31 = vadd.f32 %v4032_v8, %v3018_v30  ;;  %v4044_v30 = vld [vmem:[%s4186_s25 + $0x68] sm:$0xff] }
 0x255   : > { %3174 = vst.msk [vmem:[%s4969_s29 + $0x8] sm:$0xff] %vm2368_vm9, %v3142_v31 }
 0x25a   : > { %v3750_v25 = vpop.f32.mrf.mxu0 }
 0x25b   : > { %v2867_v35 = vadd.f32 %v3750_v25, %v4894_v3 }
 0x25c   : > { %v2858_v29 = vpop.f32.mrf.mxu0 }
 0x25d   : > { %v2859_v34 = vadd.f32 %v4894_v3, %v2858_v29  ;;  %v2903_v43 = vmax.f32 %v2867_v35, 0.0 }
 0x25e   : > { %v3751_v6 = vpop.f32.mrf.mxu0 }
 0x25f   : > { %v2870_v32 = vadd.f32 %v3751_v6, %v4894_v3  ;;  %v2901_v50 = vmax.f32 %v2859_v34, 0.0  ;;  %v4045_v6 = vld [vmem:[%s4186_s25 + $0x90] sm:$0xff] }
 0x260   : > { %v2861_v16 = vpop.f32.mrf.mxu0 }
 0x261   : > { %v2862_v26 = vadd.f32 %v4894_v3, %v2861_v16  ;;  %v2904_v40 = vmax.f32 %v2870_v32, 0.0  ;;  %v4046_v16 = vld [vmem:[%s4186_s25 + $0x80] sm:$0xff] }
 0x263   : > { %v2902_v28 = vmax.f32 %v2862_v26, 0.0  ;;  %v2920_v48 = vpack.c.bf16 %v2904_v40, %v2903_v43 }
 0x265   : > { %v2919_v46 = vpack.c.bf16 %v2902_v28, %v2901_v50  ;;  %v4047_v28 = vld [vmem:[%s4186_s25 + $0x98] sm:$0xff] }
 0x267   : > { %3782 = vmatprep.mubr.msk.bf16.mxu1 %vm2368_vm9, %v2919_v46 }
 0x268   : > { %3783 = vmatmul.mubr.msk.bf16.gmra.mxu1 %vm2368_vm9, %v2920_v48  ;;  %v4048_v48 = vld [vmem:[%s4186_s25 + $0x88] sm:$0xff] }
 0x26a   : > { %v3760_v44 = vpop.f32.mrf.mxu1 }
 0x26b   : > { %v3039_v41 = vadd.f32 %v3760_v44, %v4959_v14 }
 0x26c   : > { %v3030_v3 = vpop.f32.mrf.mxu1 }
 0x26d   : > { %v3147_v47 = vadd.f32 %v4033_v39, %v3039_v41  ;;  %v3031_v4 = vadd.f32 %v4959_v14, %v3030_v3 }
 0x26e   : > { %v3761_v24 = vpop.f32.mrf.mxu1 }
 0x26f   : > { %3179 = vst.msk [vmem:[%s4969_s29 + $0x30] sm:$0xff] %vm2368_vm9, %v3147_v47  ;;  %v3145_v49 = vadd.f32 %v4034_v42, %v3031_v4  ;;  %v3042_v18 = vadd.f32 %v3761_v24, %v4959_v14  ;;  %v4049_v47 = vld [vmem:[%s4186_s25 + $0xb0] sm:$0xff] }
 0x270   : > { %v3033_v59 = vpop.f32.mrf.mxu1 }
 0x271   : > { %3177 = vst.msk [vmem:[%s4969_s29 + $0x20] sm:$0xff] %vm2368_vm9, %v3145_v49  ;;  %v3148_v17 = vadd.f32 %v4035_v54, %v3042_v18  ;;  %v3034_v57 = vadd.f32 %v4959_v14, %v3033_v59  ;;  %v4050_v49 = vld [vmem:[%s4186_s25 + $0xa0] sm:$0xff] }
 0x273   : > { %3180 = vst.msk [vmem:[%s4969_s29 + $0x38] sm:$0xff] %vm2368_vm9, %v3148_v17  ;;  %v3146_v33 = vadd.f32 %v4036_v20, %v3034_v57  ;;  %v4051_v17 = vld [vmem:[%s4186_s25 + $0xb8] sm:$0xff] }
 0x275   : > { %3178 = vst.msk [vmem:[%s4969_s29 + $0x28] sm:$0xff] %vm2368_vm9, %v3146_v33  ;;  %v4052_v33 = vld [vmem:[%s4186_s25 + $0xa8] sm:$0xff] }
 0x28a   : > { %v3764_v58 = vpop.f32.mrf.mxu1 }
 0x28b   : > { %v3055_v45 = vadd.f32 %v3764_v58, %v4959_v14 }
 0x28c   : > { %v3046_v36 = vpop.f32.mrf.mxu1 }
 0x28d   : > { %v3151_v2 = vadd.f32 %v4037_v52, %v3055_v45  ;;  %v3047_v60 = vadd.f32 %v4959_v14, %v3046_v36 }
 0x28e   : > { %v3765_v37 = vpop.f32.mrf.mxu1 }
 0x28f   : > { %3183 = vst.msk [vmem:[%s4969_s29 + $0x50] sm:$0xff] %vm2368_vm9, %v3151_v2  ;;  %v3149_v10 = vadd.f32 %v4038_v62, %v3047_v60  ;;  %v3058_v22 = vadd.f32 %v3765_v37, %v4959_v14  ;;  %v4053_v2 = vld [vmem:[%s4186_s25 + $0xd0] sm:$0xff] }
 0x290   : > { %v3049_v63 = vpop.f32.mrf.mxu1 }
 0x291   : > { %3181 = vst.msk [vmem:[%s4969_s29 + $0x40] sm:$0xff] %vm2368_vm9, %v3149_v10  ;;  %v3152_v51 = vadd.f32 %v4039_v1, %v3058_v22  ;;  %v3050_v0 = vadd.f32 %v4959_v14, %v3049_v63  ;;  %v4054_v10 = vld [vmem:[%s4186_s25 + $0xc0] sm:$0xff] }
 0x293   : > { %3184 = vst.msk [vmem:[%s4969_s29 + $0x58] sm:$0xff] %vm2368_vm9, %v3152_v51  ;;  %v3150_v12 = vadd.f32 %v4040_v11, %v3050_v0  ;;  %v4055_v51 = vld [vmem:[%s4186_s25 + $0xd8] sm:$0xff] }
 0x295   : > { %3182 = vst.msk [vmem:[%s4969_s29 + $0x48] sm:$0xff] %vm2368_vm9, %v3150_v12  ;;  %v4056_v12 = vld [vmem:[%s4186_s25 + $0xc8] sm:$0xff] }
 0x2aa   : > { %v3768_v61 = vpop.f32.mrf.mxu1 }
 0x2ab   : > { %v3071_v53 = vadd.f32 %v3768_v61, %v4959_v14 }
 0x2ac   : > { %v3062_v15 = vpop.f32.mrf.mxu1 }
 0x2ad   : > { %v3155_v7 = vadd.f32 %v4041_v19, %v3071_v53  ;;  %v3063_v55 = vadd.f32 %v4959_v14, %v3062_v15 }
 0x2ae   : > { %v3769_v56 = vpop.f32.mrf.mxu1 }
 0x2af   : > { %3187 = vst.msk [vmem:[%s4969_s29 + $0x70] sm:$0xff] %vm2368_vm9, %v3155_v7  ;;  %v3153_v9 = vadd.f32 %v4042_v23, %v3063_v55  ;;  %v3074_v27 = vadd.f32 %v3769_v56, %v4959_v14  ;;  %v4057_v7 = vld [vmem:[%s4186_s25 + $0xf0] sm:$0xff] }
 0x2b0   : > { %v3065_v13 = vpop.f32.mrf.mxu1 }
 0x2b1   : > { %3185 = vst.msk [vmem:[%s4969_s29 + $0x60] sm:$0xff] %vm2368_vm9, %v3153_v9  ;;  %v3156_v21 = vadd.f32 %v4043_v5, %v3074_v27  ;;  %v3066_v38 = vadd.f32 %v4959_v14, %v3065_v13  ;;  %v4058_v9 = vld [vmem:[%s4186_s25 + $0xe0] sm:$0xff] }
 0x2b3   : > { %3188 = vst.msk [vmem:[%s4969_s29 + $0x78] sm:$0xff] %vm2368_vm9, %v3156_v21  ;;  %v3154_v8 = vadd.f32 %v4044_v30, %v3066_v38  ;;  %v4059_v21 = vld [vmem:[%s4186_s25 + $0xf8] sm:$0xff] }
 0x2b5   : > { %3186 = vst.msk [vmem:[%s4969_s29 + $0x68] sm:$0xff] %vm2368_vm9, %v3154_v8  ;;  %v4060_v8 = vld [vmem:[%s4186_s25 + $0xe8] sm:$0xff] }
 0x2cb   : > { %v3772_v31 = vpop.f32.mrf.mxu1 }
 0x2cc   : > { %v3087_v25 = vadd.f32 %v3772_v31, %v4959_v14 }
 0x2cd   : > { %v3078_v29 = vpop.f32.mrf.mxu1 }
 0x2ce   : > { %v3159_v34 = vadd.f32 %v4045_v6, %v3087_v25  ;;  %v3079_v32 = vadd.f32 %v4959_v14, %v3078_v29 }
 0x2cf   : > { %v3773_v35 = vpop.f32.mrf.mxu1 }
 0x2d0   : > { %3191 = vst.msk [vmem:[%s4969_s29 + $0x90] sm:$0xff] %vm2368_vm9, %v3159_v34  ;;  %v3157_v26 = vadd.f32 %v4046_v16, %v3079_v32  ;;  %v3090_v40 = vadd.f32 %v3773_v35, %v4959_v14 }
 0x2d1   : > { %v3081_v50 = vpop.f32.mrf.mxu1 }
 0x2d2   : > { %3189 = vst.msk [vmem:[%s4969_s29 + $0x80] sm:$0xff] %vm2368_vm9, %v3157_v26  ;;  %v3160_v43 = vadd.f32 %v4047_v28, %v3090_v40  ;;  %v3082_v46 = vadd.f32 %v4959_v14, %v3081_v50 }
 0x2d4   : > { %3192 = vst.msk [vmem:[%s4969_s29 + $0x98] sm:$0xff] %vm2368_vm9, %v3160_v43  ;;  %v3158_v44 = vadd.f32 %v4048_v48, %v3082_v46 }
 0x2d6   : > { %3190 = vst.msk [vmem:[%s4969_s29 + $0x88] sm:$0xff] %vm2368_vm9, %v3158_v44 }
 0x2eb   : > { %v3776_v41 = vpop.f32.mrf.mxu1 }
 0x2ec   : > { %v3103_v3 = vadd.f32 %v3776_v41, %v4959_v14 }
 0x2ed   : > { %v3094_v39 = vpop.f32.mrf.mxu1 }
 0x2ee   : > { %v3163_v4 = vadd.f32 %v4049_v47, %v3103_v3  ;;  %v3095_v24 = vadd.f32 %v4959_v14, %v3094_v39 }
 0x2ef   : > { %v3777_v42 = vpop.f32.mrf.mxu1 }
 0x2f0   : > { %3195 = vst.msk [vmem:[%s4969_s29 + $0xb0] sm:$0xff] %vm2368_vm9, %v3163_v4  ;;  %v3161_v18 = vadd.f32 %v4050_v49, %v3095_v24  ;;  %v3106_v59 = vadd.f32 %v3777_v42, %v4959_v14 }
 0x2f1   : > { %v3097_v54 = vpop.f32.mrf.mxu1 }
 0x2f2   : > { %3193 = vst.msk [vmem:[%s4969_s29 + $0xa0] sm:$0xff] %vm2368_vm9, %v3161_v18  ;;  %v3164_v57 = vadd.f32 %v4051_v17, %v3106_v59  ;;  %v3098_v20 = vadd.f32 %v4959_v14, %v3097_v54 }
 0x2f4   : > { %3196 = vst.msk [vmem:[%s4969_s29 + $0xb8] sm:$0xff] %vm2368_vm9, %v3164_v57  ;;  %v3162_v58 = vadd.f32 %v4052_v33, %v3098_v20 }
 0x2f6   : > { %3194 = vst.msk [vmem:[%s4969_s29 + $0xa8] sm:$0xff] %vm2368_vm9, %v3162_v58 }
 0x30b   : > { %v3780_v45 = vpop.f32.mrf.mxu1 }
 0x30c   : > { %v3119_v36 = vadd.f32 %v3780_v45, %v4959_v14 }
 0x30d   : > { %v3110_v52 = vpop.f32.mrf.mxu1 }
 0x30e   : > { %v3167_v60 = vadd.f32 %v4053_v2, %v3119_v36  ;;  %v3111_v37 = vadd.f32 %v4959_v14, %v3110_v52 }
 0x30f   : > { %v3781_v62 = vpop.f32.mrf.mxu1 }
 0x310   : > { %3199 = vst.msk [vmem:[%s4969_s29 + $0xd0] sm:$0xff] %vm2368_vm9, %v3167_v60  ;;  %v3165_v22 = vadd.f32 %v4054_v10, %v3111_v37  ;;  %v3122_v63 = vadd.f32 %v3781_v62, %v4959_v14 }
 0x311   : > { %v3113_v1 = vpop.f32.mrf.mxu1 }
 0x312   : > { %3197 = vst.msk [vmem:[%s4969_s29 + $0xc0] sm:$0xff] %vm2368_vm9, %v3165_v22  ;;  %v3168_v0 = vadd.f32 %v4055_v51, %v3122_v63  ;;  %v3114_v11 = vadd.f32 %v4959_v14, %v3113_v1 }
 0x314   : > { %3200 = vst.msk [vmem:[%s4969_s29 + $0xd8] sm:$0xff] %vm2368_vm9, %v3168_v0  ;;  %v3166_v61 = vadd.f32 %v4056_v12, %v3114_v11 }
 0x316   : > { %3198 = vst.msk [vmem:[%s4969_s29 + $0xc8] sm:$0xff] %vm2368_vm9, %v3166_v61 }
 0x328   : > { %v3784_v53 = vpop.f32.mrf.mxu1 }
 0x329   : > { %v3135_v15 = vadd.f32 %v3784_v53, %v4959_v14 }
 0x32a   : > { %v3126_v19 = vpop.f32.mrf.mxu1 }
 0x32b   : > { %v3171_v55 = vadd.f32 %v4057_v7, %v3135_v15  ;;  %v3127_v56 = vadd.f32 %v4959_v14, %v3126_v19 }
 0x32c   : > { %v3785_v23 = vpop.f32.mrf.mxu1 }
 0x32d   : > { %3203 = vst.msk [vmem:[%s4969_s29 + $0xf0] sm:$0xff] %vm2368_vm9, %v3171_v55  ;;  %v3169_v27 = vadd.f32 %v4058_v9, %v3127_v56  ;;  %v3138_v13 = vadd.f32 %v3785_v23, %v4959_v14 }
 0x32e   : > { %v3129_v5 = vpop.f32.mrf.mxu1 }
 0x32f   : > { %3201 = vst.msk [vmem:[%s4969_s29 + $0xe0] sm:$0xff] %vm2368_vm9, %v3169_v27  ;;  %v3172_v38 = vadd.f32 %v4059_v21, %v3138_v13  ;;  %v3130_v30 = vadd.f32 %v4959_v14, %v3129_v5 }
 0x331   : > { %3204 = vst.msk [vmem:[%s4969_s29 + $0xf8] sm:$0xff] %vm2368_vm9, %v3172_v38  ;;  %v3170_v31 = vadd.f32 %v4060_v8, %v3130_v30 }
 0x333   : > { %3202 = vst.msk [vmem:[%s4969_s29 + $0xe8] sm:$0xff] %vm2368_vm9, %v3170_v31 }
 0x334 PF: > { %s15_s20 = sadd.s32 1, %s4083_s20   ;;  %s5121_s18 = smov %s4079_s19 }
 0x335   : > { %p12_p5 = scmp.ge.s32.totalorder %s15_s20, 4   ;;  %s5122_s19 = smov %s5124_s21 }
 0x337   :  { %14 = sbr.rel (!%p12_p5) target bundleno = 2 (0x2), region = 93 }

</bundles_post_ra>
